<compile_context>
chip_gen: v7x
topology: tpu7x:2x2x1
jax: 0.10.0
libtpu: 0.0.40
codegen_flags: <defaults>
</compile_context>

<pallas_src>
import functools
import math

import jax
import jax.numpy as jnp
from jax.experimental import pallas as pl
from jax.experimental.pallas import tpu as pltpu


# ----------------------------- Pallas kernels ------------------------------

def _mha_block_kernel(xq_ref, xkv_ref, wq_ref, bq_ref, wkv_ref, bkv_ref,
                      wo_ref, bo_ref, g_ref, beta_ref, o_ref,
                      *, nhead, scale, eps, compute_dtype):
    """One (batch, query-row-tile) step of a full post-norm attention block:
       LayerNorm(x + OutProj(MultiHeadAttn(QProj(x), KVProj(kv_src))))."""
    xq = xq_ref[0]                      # (tq, D)  f32 residual input
    xkv = xkv_ref[0]                    # (S,  D)
    D = xq.shape[-1]
    dh = D // nhead

    # fused projections; q/k/v never leave VMEM
    q = jnp.dot(xq.astype(compute_dtype), wq_ref[...].astype(compute_dtype),
                preferred_element_type=jnp.float32) + bq_ref[...]       # (tq, D)
    kv = jnp.dot(xkv.astype(compute_dtype), wkv_ref[...].astype(compute_dtype),
                 preferred_element_type=jnp.float32) + bkv_ref[...]     # (S, 2D)
    k = kv[:, :D]
    v = kv[:, D:]

    # per-head attention (static unroll; contraction on last axes, no k.T)
    outs = []
    for h in range(nhead):
        lo, hi = h * dh, (h + 1) * dh
        q_h = q[:, lo:hi].astype(compute_dtype)          # (tq, dh)
        k_h = k[:, lo:hi].astype(compute_dtype)          # (S, dh)
        v_h = v[:, lo:hi].astype(compute_dtype)          # (S, dh)
        s = jax.lax.dot_general(q_h, k_h, (((1,), (1,)), ((), ())),
                                preferred_element_type=jnp.float32) * scale
        s = s - jnp.max(s, axis=-1, keepdims=True)
        p = jnp.exp(s)
        p = p * pl.reciprocal(jnp.sum(p, axis=-1, keepdims=True), approx=True)
        outs.append(jnp.dot(p.astype(compute_dtype), v_h,
                            preferred_element_type=jnp.float32))
    attn = jnp.concatenate(outs, axis=-1)                # (tq, D)

    # out-projection + residual + LayerNorm epilogue (stats in f32)
    y = jnp.dot(attn.astype(compute_dtype), wo_ref[...].astype(compute_dtype),
                preferred_element_type=jnp.float32) + bo_ref[...]
    y = y + xq
    mu = jnp.mean(y, axis=-1, keepdims=True)
    c = y - mu
    var = jnp.mean(c * c, axis=-1, keepdims=True)
    o_ref[0] = c * jax.lax.rsqrt(var + eps) * g_ref[...] + beta_ref[...]


def _ffn_block_kernel(x_ref, w1_ref, b1_ref, w2_ref, b2_ref, g_ref, beta_ref,
                      o_ref, *, eps, compute_dtype):
    """One row-tile of LayerNorm(x + W2 @ relu(W1 @ x + b1) + b2)."""
    x = x_ref[...]                                       # (tm, D) f32
    h = jnp.dot(x.astype(compute_dtype), w1_ref[...].astype(compute_dtype),
                preferred_element_type=jnp.float32) + b1_ref[...]       # (tm, Fh)
    h = jnp.maximum(h, 0.0)
    y = jnp.dot(h.astype(compute_dtype), w2_ref[...].astype(compute_dtype),
                preferred_element_type=jnp.float32) + b2_ref[...]       # (tm, D)
    y = y + x
    mu = jnp.mean(y, axis=-1, keepdims=True)
    c = y - mu
    var = jnp.mean(c * c, axis=-1, keepdims=True)
    o_ref[...] = c * jax.lax.rsqrt(var + eps) * g_ref[...] + beta_ref[...]


# ----------------------------- Pallas wrappers ------------------------------

def mha_block(x_q, x_kv, ap, ln_g, ln_b, *, nhead, eps=1e-5,
              compute_dtype=jnp.float32, tq=None):
    """x_q: (B, T, D) query/residual source, x_kv: (B, S, D) key/value source."""
    B, T, D = x_q.shape
    S = x_kv.shape[1]
    if tq is None:
        tq = T if T <= 128 else 128
    if tq != T:
        assert tq % 8 == 0 and T % tq == 0, "query row tile must be 8-aligned"
    scale = 1.0 / math.sqrt(D // nhead)
    kernel = functools.partial(_mha_block_kernel, nhead=nhead, scale=scale,
                               eps=eps, compute_dtype=compute_dtype)
    return pl.pallas_call(
        kernel,
        out_shape=jax.ShapeDtypeStruct((B, T, D), jnp.float32),
        grid=(B, T // tq),
        in_specs=[
            pl.BlockSpec((1, tq, D), lambda b, t: (b, t, 0)),    # x_q tile
            pl.BlockSpec((1, S, D), lambda b, t: (b, 0, 0)),     # x_kv
            pl.BlockSpec((D, D), lambda b, t: (0, 0)),           # wq
            pl.BlockSpec((1, D), lambda b, t: (0, 0)),           # bq
            pl.BlockSpec((D, 2 * D), lambda b, t: (0, 0)),       # wkv (fused)
            pl.BlockSpec((1, 2 * D), lambda b, t: (0, 0)),       # bkv
            pl.BlockSpec((D, D), lambda b, t: (0, 0)),           # wo
            pl.BlockSpec((1, D), lambda b, t: (0, 0)),           # bo
            pl.BlockSpec((1, D), lambda b, t: (0, 0)),           # ln gamma
            pl.BlockSpec((1, D), lambda b, t: (0, 0)),           # ln beta
        ],
        out_specs=pl.BlockSpec((1, tq, D), lambda b, t: (b, t, 0)),
        compiler_params=pltpu.CompilerParams(
            dimension_semantics=("parallel", "parallel")),
    )(x_q, x_kv, ap["wq"], ap["bq"], ap["wkv"], ap["bkv"],
      ap["wo"], ap["bo"], ln_g, ln_b)


def ffn_block(x, p, *, eps=1e-5, compute_dtype=jnp.float32, tm=None):
    """x: (B, T, D) -> LayerNorm(x + FFN(x))."""
    B, T, D = x.shape
    M = B * T
    x2 = x.reshape(M, D)
    Fh = p["w1"].shape[1]
    if tm is None:
        tm = M if M <= 256 else 256
    if tm != M:
        assert tm % 8 == 0 and M % tm == 0, "row tile must be 8-aligned"
    kernel = functools.partial(_ffn_block_kernel, eps=eps,
                               compute_dtype=compute_dtype)
    out = pl.pallas_call(
        kernel,
        out_shape=jax.ShapeDtypeStruct((M, D), jnp.float32),
        grid=(M // tm,),
        in_specs=[
            pl.BlockSpec((tm, D), lambda i: (i, 0)),
            pl.BlockSpec((D, Fh), lambda i: (0, 0)),
            pl.BlockSpec((1, Fh), lambda i: (0, 0)),
            pl.BlockSpec((Fh, D), lambda i: (0, 0)),
            pl.BlockSpec((1, D), lambda i: (0, 0)),
            pl.BlockSpec((1, D), lambda i: (0, 0)),
            pl.BlockSpec((1, D), lambda i: (0, 0)),
        ],
        out_specs=pl.BlockSpec((tm, D), lambda i: (i, 0)),
        compiler_params=pltpu.CompilerParams(
            dimension_semantics=("parallel",)),
    )(x2, p["w1"], p["b1"], p["w2"], p["b2"], p["norm3_w"], p["norm3_b"])
    return out.reshape(B, T, D)


# --------------------------- model forward (glue) ---------------------------

def decoder_layer(x, memory, p, nhead, compute_dtype):
    """nn.TransformerDecoderLayer (norm_first=False, relu, dropout=identity)."""
    x = mha_block(x, x, p["self_attn"], p["norm1_w"], p["norm1_b"],
                  nhead=nhead, compute_dtype=compute_dtype)
    x = mha_block(x, memory, p["multihead_attn"], p["norm2_w"], p["norm2_b"],
                  nhead=nhead, compute_dtype=compute_dtype)
    x = ffn_block(x, p, compute_dtype=compute_dtype)
    return x


@functools.partial(jax.jit, static_argnames=("nhead", "compute_dtype"))
def multi_model_decoder(target, memory, params, nhead,
                        compute_dtype=jnp.float32):
    """nn.TransformerDecoder with norm=None: stack of layers, no final norm."""
    x = target
    for p in params:
        x = decoder_layer(x, memory, p, nhead, compute_dtype)
    return x


# ------------------------------ param handling -------------------------------

def init_params(key, d_model, dim_ff, num_layers):
    """PyTorch-convention parameter layout (used by the pure-JAX reference)."""
    def nrm(k, shape, scale=0.05):
        return scale * jax.random.normal(k, shape, jnp.float32)

    params = []
    for layer_idx in range(num_layers):
        keys = jax.random.split(jax.random.fold_in(key, layer_idx), 12)

        def attn_params(k0, k1, k2, k3):
            return {
                "in_proj_weight": nrm(k0, (3 * d_model, d_model)),
                "in_proj_bias": nrm(k1, (3 * d_model,)),
                "out_proj_weight": nrm(k2, (d_model, d_model)),
                "out_proj_bias": nrm(k3, (d_model,)),
            }

        params.append({
            "self_attn": attn_params(keys[0], keys[1], keys[2], keys[3]),
            "multihead_attn": attn_params(keys[4], keys[5], keys[6], keys[7]),
            "linear1_w": nrm(keys[8], (dim_ff, d_model)),
            "linear1_b": nrm(keys[9], (dim_ff,)),
            "linear2_w": nrm(keys[10], (d_model, dim_ff)),
            "linear2_b": nrm(keys[11], (d_model,)),
            "norm1_w": jnp.ones((d_model,), jnp.float32),
            "norm1_b": jnp.zeros((d_model,), jnp.float32),
            "norm2_w": jnp.ones((d_model,), jnp.float32),
            "norm2_b": jnp.zeros((d_model,), jnp.float32),
            "norm3_w": jnp.ones((d_model,), jnp.float32),
            "norm3_b": jnp.zeros((d_model,), jnp.float32),
        })
    return params


def prepare_params(params):
    """One-time re-layout for the kernels: right-mult (in,out) weights,
    fused K/V projection, (1, N)-shaped biases / LN params. Done ONCE,
    outside the forward pass (no per-call transposes)."""
    prepped = []
    for p in params:
        def attn(ap):
            D = ap["out_proj_weight"].shape[0]
            wq, wk, wv = jnp.split(ap["in_proj_weight"], 3, axis=0)
            bq, bk, bv = jnp.split(ap["in_proj_bias"], 3, axis=0)
            return {
                "wq": wq.T,                                          # (D, D)
                "bq": bq.reshape(1, D),
                "wkv": jnp.concatenate([wk.T, wv.T], axis=1),        # (D, 2D)
                "bkv": jnp.concatenate([bk, bv]).reshape(1, 2 * D),
                "wo": ap["out_proj_weight"].T,                       # (D, D)
                "bo": ap["out_proj_bias"].reshape(1, D),
            }

        D = p["norm1_w"].shape[0]
        prepped.append({
            "self_attn": attn(p["self_attn"]),
            "multihead_attn": attn(p["multihead_attn"]),
            "w1": p["linear1_w"].T,                                  # (D, Fh)
            "b1": p["linear1_b"].reshape(1, -1),
            "w2": p["linear2_w"].T,                                  # (Fh, D)
            "b2": p["linear2_b"].reshape(1, -1),
            "norm1_w": p["norm1_w"].reshape(1, D),
            "norm1_b": p["norm1_b"].reshape(1, D),
            "norm2_w": p["norm2_w"].reshape(1, D),
            "norm2_b": p["norm2_b"].reshape(1, D),
            "norm3_w": p["norm3_w"].reshape(1, D),
            "norm3_b": p["norm3_b"].reshape(1, D),
        })
    return prepped


# ------------------------- pure-JAX reference check -------------------------

def _ref_mha(q_in, k_in, v_in, p, nhead):
    D = q_in.shape[-1]
    dh = D // nhead
    wq, wk, wv = jnp.split(p["in_proj_weight"], 3, axis=0)
    bq, bk, bv = jnp.split(p["in_proj_bias"], 3, axis=0)
    q = q_in @ wq.T + bq
    k = k_in @ wk.T + bk
    v = v_in @ wv.T + bv
    B, T, _ = q.shape
    S = k.shape[1]
    q = q.reshape(B, T, nhead, dh).transpose(0, 2, 1, 3)
    k = k.reshape(B, S, nhead, dh).transpose(0, 2, 1, 3)
    v = v.reshape(B, S, nhead, dh).transpose(0, 2, 1, 3)
    s = jnp.einsum("bhtd,bhsd->bhts", q, k) / math.sqrt(dh)
    a = jax.nn.softmax(s, axis=-1)
    o = jnp.einsum("bhts,bhsd->bhtd", a, v)
    o = o.transpose(0, 2, 1, 3).reshape(B, T, D)
    return o @ p["out_proj_weight"].T + p["out_proj_bias"]


def _ref_ln(y, g, b, eps=1e-5):
    mu = jnp.mean(y, axis=-1, keepdims=True)
    var = jnp.mean((y - mu) ** 2, axis=-1, keepdims=True)
    return (y - mu) * jax.lax.rsqrt(var + eps) * g + b


def _ref_decoder(target, memory, params, nhead):
    x = target
    for p in params:
        x = _ref_ln(x + _ref_mha(x, x, x, p["self_attn"], nhead),
                    p["norm1_w"], p["norm1_b"])
        x = _ref_ln(x + _ref_mha(x, memory, memory, p["multihead_attn"], nhead),
                    p["norm2_w"], p["norm2_b"])
        h = jnp.maximum(x @ p["linear1_w"].T + p["linear1_b"], 0.0)
        h = h @ p["linear2_w"].T + p["linear2_b"]
        x = _ref_ln(x + h, p["norm3_w"], p["norm3_b"])
    return x


# --------------------------------- main -------------------------------------

if __name__ == "__main__":
    # Small config consistent with MultiModelDecoderConfig's knobs.
    d_model, dim_feedforward, nhead, num_layers = 32, 64, 4, 2
    B, T, S = 2, 8, 8   # target seq len T, memory seq len S

    key = jax.random.PRNGKey(0)
    k_t, k_m, k_p = jax.random.split(key, 3)
    target = jax.random.normal(k_t, (B, T, d_model), jnp.float32)
    memory = jax.random.normal(k_m, (B, S, d_model), jnp.float32)

    params = init_params(k_p, d_model, dim_feedforward, num_layers)
    kparams = prepare_params(params)   # one-time weight re-layout

    # compute_dtype=jnp.float32 for the tight numerical check; on v6e/v7x pass
    # jnp.bfloat16 for MXU throughput (accumulation / LN stats stay f32).
    out = multi_model_decoder(target, memory, kparams, nhead=nhead,
                              compute_dtype=jnp.float32)
    out = jax.block_until_ready(out)

    ref = _ref_decoder(target, memory, params, nhead)
    assert out.shape == (B, T, d_model)
    # tolerance covers the EUP approximate reciprocal used in the softmax
    assert jnp.allclose(out, ref, atol=2e-3, rtol=2e-3), "mismatch vs reference"

    print("KERNEL_OK")
</pallas_src>

<mosaic_0001>
module attributes {stable_mosaic.version = 11 : i64} {
  func.func @_mha_block_kernel(%arg0: i32, %arg1: i32, %arg2: memref<1x8x32xf32, #tpu.memory_space<vmem>>, %arg3: memref<1x8x32xf32, #tpu.memory_space<vmem>>, %arg4: memref<32x32xf32, #tpu.memory_space<vmem>>, %arg5: memref<1x32xf32, #tpu.memory_space<vmem>>, %arg6: memref<32x64xf32, #tpu.memory_space<vmem>>, %arg7: memref<1x64xf32, #tpu.memory_space<vmem>>, %arg8: memref<32x32xf32, #tpu.memory_space<vmem>>, %arg9: memref<1x32xf32, #tpu.memory_space<vmem>>, %arg10: memref<1x32xf32, #tpu.memory_space<vmem>>, %arg11: memref<1x32xf32, #tpu.memory_space<vmem>>, %arg12: memref<1x8x32xf32, #tpu.memory_space<vmem>>) attributes {dimension_semantics = [#tpu.dimension_semantics<parallel>, #tpu.dimension_semantics<parallel>], iteration_bounds = array<i64: 2, 1>, scalar_prefetch = 0 : i64, scratch_operands = 0 : i64, tpu.core_type = #tpu.core_type<tc>, window_params = [{transform_indices = @transform_0, window_bounds = array<i64: 1, 8, 32>}, {transform_indices = @transform_1, window_bounds = array<i64: 1, 8, 32>}, {pipeline_mode = #tpu.pipeline_mode<synchronous>, transform_indices = @transform_2, window_bounds = array<i64: 32, 32>}, {pipeline_mode = #tpu.pipeline_mode<synchronous>, transform_indices = @transform_3, window_bounds = array<i64: 1, 32>}, {pipeline_mode = #tpu.pipeline_mode<synchronous>, transform_indices = @transform_4, window_bounds = array<i64: 32, 64>}, {pipeline_mode = #tpu.pipeline_mode<synchronous>, transform_indices = @transform_5, window_bounds = array<i64: 1, 64>}, {pipeline_mode = #tpu.pipeline_mode<synchronous>, transform_indices = @transform_6, window_bounds = array<i64: 32, 32>}, {pipeline_mode = #tpu.pipeline_mode<synchronous>, transform_indices = @transform_7, window_bounds = array<i64: 1, 32>}, {pipeline_mode = #tpu.pipeline_mode<synchronous>, transform_indices = @transform_8, window_bounds = array<i64: 1, 32>}, {pipeline_mode = #tpu.pipeline_mode<synchronous>, transform_indices = @transform_9, window_bounds = array<i64: 1, 32>}, {transform_indices = @transform_10, window_bounds = array<i64: 1, 8, 32>}]} {
    %c0 = arith.constant 0 : index
    %c0_0 = arith.constant 0 : index
    %c0_1 = arith.constant 0 : index
    %0 = vector.load %arg2[%c0, %c0_0, %c0_1] : memref<1x8x32xf32, #tpu.memory_space<vmem>>, vector<1x8x32xf32>
    %1 = vector.shape_cast %0 : vector<1x8x32xf32> to vector<8x32xf32>
    %c0_2 = arith.constant 0 : index
    %c0_3 = arith.constant 0 : index
    %c0_4 = arith.constant 0 : index
    %2 = vector.load %arg3[%c0_2, %c0_3, %c0_4] : memref<1x8x32xf32, #tpu.memory_space<vmem>>, vector<1x8x32xf32>
    %3 = vector.shape_cast %2 : vector<1x8x32xf32> to vector<8x32xf32>
    %c0_5 = arith.constant 0 : index
    %c0_6 = arith.constant 0 : index
    %4 = vector.load %arg4[%c0_5, %c0_6] : memref<32x32xf32, #tpu.memory_space<vmem>>, vector<32x32xf32>
    %cst = arith.constant dense<0.000000e+00> : vector<8x32xf32>
    %5 = tpu.matmul %1, %4, %cst {dimension_numbers = #tpu.dot_dimension_numbers<[1], [0], [0], [1], [0, 0, 1, 1], [], []>} : vector<8x32xf32>, vector<32x32xf32>, vector<8x32xf32> -> vector<8x32xf32>
    %c0_7 = arith.constant 0 : index
    %c0_8 = arith.constant 0 : index
    %6 = vector.load %arg5[%c0_7, %c0_8] : memref<1x32xf32, #tpu.memory_space<vmem>>, vector<1x32xf32>
    %7 = vector.broadcast %6 : vector<1x32xf32> to vector<8x32xf32>
    %8 = arith.addf %5, %7 : vector<8x32xf32>
    %c0_9 = arith.constant 0 : index
    %c0_10 = arith.constant 0 : index
    %9 = vector.load %arg6[%c0_9, %c0_10] : memref<32x64xf32, #tpu.memory_space<vmem>>, vector<32x64xf32>
    %cst_11 = arith.constant dense<0.000000e+00> : vector<8x64xf32>
    %10 = tpu.matmul %3, %9, %cst_11 {dimension_numbers = #tpu.dot_dimension_numbers<[1], [0], [0], [1], [0, 0, 1, 1], [], []>} : vector<8x32xf32>, vector<32x64xf32>, vector<8x64xf32> -> vector<8x64xf32>
    %c0_12 = arith.constant 0 : index
    %c0_13 = arith.constant 0 : index
    %11 = vector.load %arg7[%c0_12, %c0_13] : memref<1x64xf32, #tpu.memory_space<vmem>>, vector<1x64xf32>
    %12 = vector.broadcast %11 : vector<1x64xf32> to vector<8x64xf32>
    %13 = arith.addf %10, %12 : vector<8x64xf32>
    %14 = vector.extract_strided_slice %13 {offsets = [0, 0], sizes = [8, 32], strides = [1, 1]} : vector<8x64xf32> to vector<8x32xf32>
    %15 = vector.extract_strided_slice %13 {offsets = [0, 32], sizes = [8, 32], strides = [1, 1]} : vector<8x64xf32> to vector<8x32xf32>
    %16 = vector.extract_strided_slice %8 {offsets = [0, 0], sizes = [8, 8], strides = [1, 1]} : vector<8x32xf32> to vector<8x8xf32>
    %17 = vector.extract_strided_slice %14 {offsets = [0, 0], sizes = [8, 8], strides = [1, 1]} : vector<8x32xf32> to vector<8x8xf32>
    %18 = vector.extract_strided_slice %15 {offsets = [0, 0], sizes = [8, 8], strides = [1, 1]} : vector<8x32xf32> to vector<8x8xf32>
    %cst_14 = arith.constant dense<0.000000e+00> : vector<8x8xf32>
    %19 = tpu.matmul %16, %17, %cst_14 {dimension_numbers = #tpu.dot_dimension_numbers<[1], [1], [0], [0], [0, 0, 1, 0], [], []>} : vector<8x8xf32>, vector<8x8xf32>, vector<8x8xf32> -> vector<8x8xf32>
    %cst_15 = arith.constant 0.353553385 : f32
    %20 = vector.broadcast %cst_15 : f32 to vector<8x8xf32>
    %21 = arith.mulf %19, %20 : vector<8x8xf32>
    %cst_16 = arith.constant dense<0xFF800000> : vector<8xf32>
    %22 = vector.multi_reduction <maximumf>, %21, %cst_16 [1] : vector<8x8xf32> to vector<8xf32>
    %23 = vector.shape_cast %22 : vector<8xf32> to vector<8x1xf32>
    %24 = vector.broadcast %23 : vector<8x1xf32> to vector<8x8xf32>
    %25 = arith.subf %21, %24 : vector<8x8xf32>
    %26 = math.exp %25 : vector<8x8xf32>
    %cst_17 = arith.constant dense<0.000000e+00> : vector<8xf32>
    %27 = vector.multi_reduction <add>, %26, %cst_17 [1] : vector<8x8xf32> to vector<8xf32>
    %28 = vector.shape_cast %27 : vector<8xf32> to vector<8x1xf32>
    %29 = tpu.reciprocal %28 {approx = true} : vector<8x1xf32> -> vector<8x1xf32>
    %30 = vector.broadcast %29 : vector<8x1xf32> to vector<8x8xf32>
    %31 = arith.mulf %26, %30 : vector<8x8xf32>
    %cst_18 = arith.constant dense<0.000000e+00> : vector<8x8xf32>
    %32 = tpu.matmul %31, %18, %cst_18 {dimension_numbers = #tpu.dot_dimension_numbers<[1], [0], [0], [1], [0, 0, 1, 1], [], []>} : vector<8x8xf32>, vector<8x8xf32>, vector<8x8xf32> -> vector<8x8xf32>
    %33 = vector.extract_strided_slice %8 {offsets = [0, 8], sizes = [8, 8], strides = [1, 1]} : vector<8x32xf32> to vector<8x8xf32>
    %34 = vector.extract_strided_slice %14 {offsets = [0, 8], sizes = [8, 8], strides = [1, 1]} : vector<8x32xf32> to vector<8x8xf32>
    %35 = vector.extract_strided_slice %15 {offsets = [0, 8], sizes = [8, 8], strides = [1, 1]} : vector<8x32xf32> to vector<8x8xf32>
    %cst_19 = arith.constant dense<0.000000e+00> : vector<8x8xf32>
    %36 = tpu.matmul %33, %34, %cst_19 {dimension_numbers = #tpu.dot_dimension_numbers<[1], [1], [0], [0], [0, 0, 1, 0], [], []>} : vector<8x8xf32>, vector<8x8xf32>, vector<8x8xf32> -> vector<8x8xf32>
    %cst_20 = arith.constant 0.353553385 : f32
    %37 = vector.broadcast %cst_20 : f32 to vector<8x8xf32>
    %38 = arith.mulf %36, %37 : vector<8x8xf32>
    %cst_21 = arith.constant dense<0xFF800000> : vector<8xf32>
    %39 = vector.multi_reduction <maximumf>, %38, %cst_21 [1] : vector<8x8xf32> to vector<8xf32>
    %40 = vector.shape_cast %39 : vector<8xf32> to vector<8x1xf32>
    %41 = vector.broadcast %40 : vector<8x1xf32> to vector<8x8xf32>
    %42 = arith.subf %38, %41 : vector<8x8xf32>
    %43 = math.exp %42 : vector<8x8xf32>
    %cst_22 = arith.constant dense<0.000000e+00> : vector<8xf32>
    %44 = vector.multi_reduction <add>, %43, %cst_22 [1] : vector<8x8xf32> to vector<8xf32>
    %45 = vector.shape_cast %44 : vector<8xf32> to vector<8x1xf32>
    %46 = tpu.reciprocal %45 {approx = true} : vector<8x1xf32> -> vector<8x1xf32>
    %47 = vector.broadcast %46 : vector<8x1xf32> to vector<8x8xf32>
    %48 = arith.mulf %43, %47 : vector<8x8xf32>
    %cst_23 = arith.constant dense<0.000000e+00> : vector<8x8xf32>
    %49 = tpu.matmul %48, %35, %cst_23 {dimension_numbers = #tpu.dot_dimension_numbers<[1], [0], [0], [1], [0, 0, 1, 1], [], []>} : vector<8x8xf32>, vector<8x8xf32>, vector<8x8xf32> -> vector<8x8xf32>
    %50 = vector.extract_strided_slice %8 {offsets = [0, 16], sizes = [8, 8], strides = [1, 1]} : vector<8x32xf32> to vector<8x8xf32>
    %51 = vector.extract_strided_slice %14 {offsets = [0, 16], sizes = [8, 8], strides = [1, 1]} : vector<8x32xf32> to vector<8x8xf32>
    %52 = vector.extract_strided_slice %15 {offsets = [0, 16], sizes = [8, 8], strides = [1, 1]} : vector<8x32xf32> to vector<8x8xf32>
    %cst_24 = arith.constant dense<0.000000e+00> : vector<8x8xf32>
    %53 = tpu.matmul %50, %51, %cst_24 {dimension_numbers = #tpu.dot_dimension_numbers<[1], [1], [0], [0], [0, 0, 1, 0], [], []>} : vector<8x8xf32>, vector<8x8xf32>, vector<8x8xf32> -> vector<8x8xf32>
    %cst_25 = arith.constant 0.353553385 : f32
    %54 = vector.broadcast %cst_25 : f32 to vector<8x8xf32>
    %55 = arith.mulf %53, %54 : vector<8x8xf32>
    %cst_26 = arith.constant dense<0xFF800000> : vector<8xf32>
    %56 = vector.multi_reduction <maximumf>, %55, %cst_26 [1] : vector<8x8xf32> to vector<8xf32>
    %57 = vector.shape_cast %56 : vector<8xf32> to vector<8x1xf32>
    %58 = vector.broadcast %57 : vector<8x1xf32> to vector<8x8xf32>
    %59 = arith.subf %55, %58 : vector<8x8xf32>
    %60 = math.exp %59 : vector<8x8xf32>
    %cst_27 = arith.constant dense<0.000000e+00> : vector<8xf32>
    %61 = vector.multi_reduction <add>, %60, %cst_27 [1] : vector<8x8xf32> to vector<8xf32>
    %62 = vector.shape_cast %61 : vector<8xf32> to vector<8x1xf32>
    %63 = tpu.reciprocal %62 {approx = true} : vector<8x1xf32> -> vector<8x1xf32>
    %64 = vector.broadcast %63 : vector<8x1xf32> to vector<8x8xf32>
    %65 = arith.mulf %60, %64 : vector<8x8xf32>
    %cst_28 = arith.constant dense<0.000000e+00> : vector<8x8xf32>
    %66 = tpu.matmul %65, %52, %cst_28 {dimension_numbers = #tpu.dot_dimension_numbers<[1], [0], [0], [1], [0, 0, 1, 1], [], []>} : vector<8x8xf32>, vector<8x8xf32>, vector<8x8xf32> -> vector<8x8xf32>
    %67 = vector.extract_strided_slice %8 {offsets = [0, 24], sizes = [8, 8], strides = [1, 1]} : vector<8x32xf32> to vector<8x8xf32>
    %68 = vector.extract_strided_slice %14 {offsets = [0, 24], sizes = [8, 8], strides = [1, 1]} : vector<8x32xf32> to vector<8x8xf32>
    %69 = vector.extract_strided_slice %15 {offsets = [0, 24], sizes = [8, 8], strides = [1, 1]} : vector<8x32xf32> to vector<8x8xf32>
    %cst_29 = arith.constant dense<0.000000e+00> : vector<8x8xf32>
    %70 = tpu.matmul %67, %68, %cst_29 {dimension_numbers = #tpu.dot_dimension_numbers<[1], [1], [0], [0], [0, 0, 1, 0], [], []>} : vector<8x8xf32>, vector<8x8xf32>, vector<8x8xf32> -> vector<8x8xf32>
    %cst_30 = arith.constant 0.353553385 : f32
    %71 = vector.broadcast %cst_30 : f32 to vector<8x8xf32>
    %72 = arith.mulf %70, %71 : vector<8x8xf32>
    %cst_31 = arith.constant dense<0xFF800000> : vector<8xf32>
    %73 = vector.multi_reduction <maximumf>, %72, %cst_31 [1] : vector<8x8xf32> to vector<8xf32>
    %74 = vector.shape_cast %73 : vector<8xf32> to vector<8x1xf32>
    %75 = vector.broadcast %74 : vector<8x1xf32> to vector<8x8xf32>
    %76 = arith.subf %72, %75 : vector<8x8xf32>
    %77 = math.exp %76 : vector<8x8xf32>
    %cst_32 = arith.constant dense<0.000000e+00> : vector<8xf32>
    %78 = vector.multi_reduction <add>, %77, %cst_32 [1] : vector<8x8xf32> to vector<8xf32>
    %79 = vector.shape_cast %78 : vector<8xf32> to vector<8x1xf32>
    %80 = tpu.reciprocal %79 {approx = true} : vector<8x1xf32> -> vector<8x1xf32>
    %81 = vector.broadcast %80 : vector<8x1xf32> to vector<8x8xf32>
    %82 = arith.mulf %77, %81 : vector<8x8xf32>
    %cst_33 = arith.constant dense<0.000000e+00> : vector<8x8xf32>
    %83 = tpu.matmul %82, %69, %cst_33 {dimension_numbers = #tpu.dot_dimension_numbers<[1], [0], [0], [1], [0, 0, 1, 1], [], []>} : vector<8x8xf32>, vector<8x8xf32>, vector<8x8xf32> -> vector<8x8xf32>
    %84 = tpu.concatenate %32, %49, %66, %83 in 1 : vector<8x8xf32>, vector<8x8xf32>, vector<8x8xf32>, vector<8x8xf32> -> vector<8x32xf32>
    %c0_34 = arith.constant 0 : index
    %c0_35 = arith.constant 0 : index
    %85 = vector.load %arg8[%c0_34, %c0_35] : memref<32x32xf32, #tpu.memory_space<vmem>>, vector<32x32xf32>
    %cst_36 = arith.constant dense<0.000000e+00> : vector<8x32xf32>
    %86 = tpu.matmul %84, %85, %cst_36 {dimension_numbers = #tpu.dot_dimension_numbers<[1], [0], [0], [1], [0, 0, 1, 1], [], []>} : vector<8x32xf32>, vector<32x32xf32>, vector<8x32xf32> -> vector<8x32xf32>
    %c0_37 = arith.constant 0 : index
    %c0_38 = arith.constant 0 : index
    %87 = vector.load %arg9[%c0_37, %c0_38] : memref<1x32xf32, #tpu.memory_space<vmem>>, vector<1x32xf32>
    %88 = vector.broadcast %87 : vector<1x32xf32> to vector<8x32xf32>
    %89 = arith.addf %86, %88 : vector<8x32xf32>
    %90 = arith.addf %89, %1 : vector<8x32xf32>
    %cst_39 = arith.constant dense<0.000000e+00> : vector<8xf32>
    %91 = vector.multi_reduction <add>, %90, %cst_39 [1] : vector<8x32xf32> to vector<8xf32>
    %92 = vector.shape_cast %91 : vector<8xf32> to vector<8x1xf32>
    %cst_40 = arith.constant 3.200000e+01 : f32
    %93 = vector.broadcast %cst_40 : f32 to vector<8x1xf32>
    %94 = arith.divf %92, %93 : vector<8x1xf32>
    %95 = vector.broadcast %94 : vector<8x1xf32> to vector<8x32xf32>
    %96 = arith.subf %90, %95 : vector<8x32xf32>
    %97 = arith.mulf %96, %96 : vector<8x32xf32>
    %cst_41 = arith.constant dense<0.000000e+00> : vector<8xf32>
    %98 = vector.multi_reduction <add>, %97, %cst_41 [1] : vector<8x32xf32> to vector<8xf32>
    %99 = vector.shape_cast %98 : vector<8xf32> to vector<8x1xf32>
    %cst_42 = arith.constant 3.200000e+01 : f32
    %100 = vector.broadcast %cst_42 : f32 to vector<8x1xf32>
    %101 = arith.divf %99, %100 : vector<8x1xf32>
    %cst_43 = arith.constant 9.99999974E-6 : f32
    %102 = vector.broadcast %cst_43 : f32 to vector<8x1xf32>
    %103 = arith.addf %101, %102 : vector<8x1xf32>
    %104 = math.rsqrt %103 : vector<8x1xf32>
    %105 = vector.broadcast %104 : vector<8x1xf32> to vector<8x32xf32>
    %106 = arith.mulf %96, %105 : vector<8x32xf32>
    %c0_44 = arith.constant 0 : index
    %c0_45 = arith.constant 0 : index
    %107 = vector.load %arg10[%c0_44, %c0_45] : memref<1x32xf32, #tpu.memory_space<vmem>>, vector<1x32xf32>
    %108 = vector.broadcast %107 : vector<1x32xf32> to vector<8x32xf32>
    %109 = arith.mulf %106, %108 : vector<8x32xf32>
    %c0_46 = arith.constant 0 : index
    %c0_47 = arith.constant 0 : index
    %110 = vector.load %arg11[%c0_46, %c0_47] : memref<1x32xf32, #tpu.memory_space<vmem>>, vector<1x32xf32>
    %111 = vector.broadcast %110 : vector<1x32xf32> to vector<8x32xf32>
    %112 = arith.addf %109, %111 : vector<8x32xf32>
    %c0_48 = arith.constant 0 : index
    %c0_49 = arith.constant 0 : index
    %c0_50 = arith.constant 0 : index
    %113 = vector.load %arg12[%c0_48, %c0_49, %c0_50] : memref<1x8x32xf32, #tpu.memory_space<vmem>>, vector<1x8x32xf32>
    %114 = vector.shape_cast %113 : vector<1x8x32xf32> to vector<8x32xf32>
    %115 = vector.shape_cast %112 : vector<8x32xf32> to vector<1x8x32xf32>
    tpu.vector_store %arg12[%c0_48, %c0_49, %c0_50], %115 {strides = array<i32>} : memref<1x8x32xf32, #tpu.memory_space<vmem>>, vector<1x8x32xf32>,
    return
  }
  func.func @transform_0(%arg0: i32, %arg1: i32) -> (i32, i32, i32) {
    %c0_i32 = arith.constant 0 : i32
    %c0_i32_0 = arith.constant 0 : i32
    return %arg0, %arg1, %c0_i32 : i32, i32, i32
  }
  func.func @transform_1(%arg0: i32, %arg1: i32) -> (i32, i32, i32) {
    %c0_i32 = arith.constant 0 : i32
    %c0_i32_0 = arith.constant 0 : i32
    %c0_i32_1 = arith.constant 0 : i32
    return %arg0, %c0_i32, %c0_i32_0 : i32, i32, i32
  }
  func.func @transform_2(%arg0: i32, %arg1: i32) -> (i32, i32) {
    %c0_i32 = arith.constant 0 : i32
    %c0_i32_0 = arith.constant 0 : i32
    %c0_i32_1 = arith.constant 0 : i32
    return %c0_i32, %c0_i32_0 : i32, i32
  }
  func.func @transform_3(%arg0: i32, %arg1: i32) -> (i32, i32) {
    %c0_i32 = arith.constant 0 : i32
    %c0_i32_0 = arith.constant 0 : i32
    %c0_i32_1 = arith.constant 0 : i32
    return %c0_i32, %c0_i32_0 : i32, i32
  }
  func.func @transform_4(%arg0: i32, %arg1: i32) -> (i32, i32) {
    %c0_i32 = arith.constant 0 : i32
    %c0_i32_0 = arith.constant 0 : i32
    %c0_i32_1 = arith.constant 0 : i32
    return %c0_i32, %c0_i32_0 : i32, i32
  }
  func.func @transform_5(%arg0: i32, %arg1: i32) -> (i32, i32) {
    %c0_i32 = arith.constant 0 : i32
    %c0_i32_0 = arith.constant 0 : i32
    %c0_i32_1 = arith.constant 0 : i32
    return %c0_i32, %c0_i32_0 : i32, i32
  }
  func.func @transform_6(%arg0: i32, %arg1: i32) -> (i32, i32) {
    %c0_i32 = arith.constant 0 : i32
    %c0_i32_0 = arith.constant 0 : i32
    %c0_i32_1 = arith.constant 0 : i32
    return %c0_i32, %c0_i32_0 : i32, i32
  }
  func.func @transform_7(%arg0: i32, %arg1: i32) -> (i32, i32) {
    %c0_i32 = arith.constant 0 : i32
    %c0_i32_0 = arith.constant 0 : i32
    %c0_i32_1 = arith.constant 0 : i32
    return %c0_i32, %c0_i32_0 : i32, i32
  }
  func.func @transform_8(%arg0: i32, %arg1: i32) -> (i32, i32) {
    %c0_i32 = arith.constant 0 : i32
    %c0_i32_0 = arith.constant 0 : i32
    %c0_i32_1 = arith.constant 0 : i32
    return %c0_i32, %c0_i32_0 : i32, i32
  }
  func.func @transform_9(%arg0: i32, %arg1: i32) -> (i32, i32) {
    %c0_i32 = arith.constant 0 : i32
    %c0_i32_0 = arith.constant 0 : i32
    %c0_i32_1 = arith.constant 0 : i32
    return %c0_i32, %c0_i32_0 : i32, i32
  }
  func.func @transform_10(%arg0: i32, %arg1: i32) -> (i32, i32, i32) {
    %c0_i32 = arith.constant 0 : i32
    %c0_i32_0 = arith.constant 0 : i32
    return %arg0, %arg1, %c0_i32 : i32, i32, i32
  }
}

module attributes {stable_mosaic.version = 11 : i64} {
  func.func @_ffn_block_kernel(%arg0: i32, %arg1: memref<16x32xf32, #tpu.memory_space<vmem>>, %arg2: memref<32x64xf32, #tpu.memory_space<vmem>>, %arg3: memref<1x64xf32, #tpu.memory_space<vmem>>, %arg4: memref<64x32xf32, #tpu.memory_space<vmem>>, %arg5: memref<1x32xf32, #tpu.memory_space<vmem>>, %arg6: memref<1x32xf32, #tpu.memory_space<vmem>>, %arg7: memref<1x32xf32, #tpu.memory_space<vmem>>, %arg8: memref<16x32xf32, #tpu.memory_space<vmem>>) attributes {dimension_semantics = [#tpu.dimension_semantics<parallel>], iteration_bounds = array<i64: 1>, scalar_prefetch = 0 : i64, scratch_operands = 0 : i64, tpu.core_type = #tpu.core_type<tc>, window_params = [{transform_indices = @transform_0, window_bounds = array<i64: 16, 32>}, {pipeline_mode = #tpu.pipeline_mode<synchronous>, transform_indices = @transform_1, window_bounds = array<i64: 32, 64>}, {pipeline_mode = #tpu.pipeline_mode<synchronous>, transform_indices = @transform_2, window_bounds = array<i64: 1, 64>}, {pipeline_mode = #tpu.pipeline_mode<synchronous>, transform_indices = @transform_3, window_bounds = array<i64: 64, 32>}, {pipeline_mode = #tpu.pipeline_mode<synchronous>, transform_indices = @transform_4, window_bounds = array<i64: 1, 32>}, {pipeline_mode = #tpu.pipeline_mode<synchronous>, transform_indices = @transform_5, window_bounds = array<i64: 1, 32>}, {pipeline_mode = #tpu.pipeline_mode<synchronous>, transform_indices = @transform_6, window_bounds = array<i64: 1, 32>}, {transform_indices = @transform_7, window_bounds = array<i64: 16, 32>}]} {
    %c0 = arith.constant 0 : index
    %c0_0 = arith.constant 0 : index
    %0 = vector.load %arg1[%c0, %c0_0] : memref<16x32xf32, #tpu.memory_space<vmem>>, vector<16x32xf32>
    %c0_1 = arith.constant 0 : index
    %c0_2 = arith.constant 0 : index
    %1 = vector.load %arg2[%c0_1, %c0_2] : memref<32x64xf32, #tpu.memory_space<vmem>>, vector<32x64xf32>
    %cst = arith.constant dense<0.000000e+00> : vector<16x64xf32>
    %2 = tpu.matmul %0, %1, %cst {dimension_numbers = #tpu.dot_dimension_numbers<[1], [0], [0], [1], [0, 0, 1, 1], [], []>} : vector<16x32xf32>, vector<32x64xf32>, vector<16x64xf32> -> vector<16x64xf32>
    %c0_3 = arith.constant 0 : index
    %c0_4 = arith.constant 0 : index
    %3 = vector.load %arg3[%c0_3, %c0_4] : memref<1x64xf32, #tpu.memory_space<vmem>>, vector<1x64xf32>
    %4 = vector.broadcast %3 : vector<1x64xf32> to vector<16x64xf32>
    %5 = arith.addf %2, %4 : vector<16x64xf32>
    %cst_5 = arith.constant 0.000000e+00 : f32
    %6 = vector.broadcast %cst_5 : f32 to vector<16x64xf32>
    %7 = arith.maximumf %5, %6 : vector<16x64xf32>
    %c0_6 = arith.constant 0 : index
    %c0_7 = arith.constant 0 : index
    %8 = vector.load %arg4[%c0_6, %c0_7] : memref<64x32xf32, #tpu.memory_space<vmem>>, vector<64x32xf32>
    %cst_8 = arith.constant dense<0.000000e+00> : vector<16x32xf32>
    %9 = tpu.matmul %7, %8, %cst_8 {dimension_numbers = #tpu.dot_dimension_numbers<[1], [0], [0], [1], [0, 0, 1, 1], [], []>} : vector<16x64xf32>, vector<64x32xf32>, vector<16x32xf32> -> vector<16x32xf32>
    %c0_9 = arith.constant 0 : index
    %c0_10 = arith.constant 0 : index
    %10 = vector.load %arg5[%c0_9, %c0_10] : memref<1x32xf32, #tpu.memory_space<vmem>>, vector<1x32xf32>
    %11 = vector.broadcast %10 : vector<1x32xf32> to vector<16x32xf32>
    %12 = arith.addf %9, %11 : vector<16x32xf32>
    %13 = arith.addf %12, %0 : vector<16x32xf32>
    %cst_11 = arith.constant dense<0.000000e+00> : vector<16xf32>
    %14 = vector.multi_reduction <add>, %13, %cst_11 [1] : vector<16x32xf32> to vector<16xf32>
    %15 = vector.shape_cast %14 : vector<16xf32> to vector<16x1xf32>
    %cst_12 = arith.constant 3.200000e+01 : f32
    %16 = vector.broadcast %cst_12 : f32 to vector<16x1xf32>
    %17 = arith.divf %15, %16 : vector<16x1xf32>
    %18 = vector.broadcast %17 : vector<16x1xf32> to vector<16x32xf32>
    %19 = arith.subf %13, %18 : vector<16x32xf32>
    %20 = arith.mulf %19, %19 : vector<16x32xf32>
    %cst_13 = arith.constant dense<0.000000e+00> : vector<16xf32>
    %21 = vector.multi_reduction <add>, %20, %cst_13 [1] : vector<16x32xf32> to vector<16xf32>
    %22 = vector.shape_cast %21 : vector<16xf32> to vector<16x1xf32>
    %cst_14 = arith.constant 3.200000e+01 : f32
    %23 = vector.broadcast %cst_14 : f32 to vector<16x1xf32>
    %24 = arith.divf %22, %23 : vector<16x1xf32>
    %cst_15 = arith.constant 9.99999974E-6 : f32
    %25 = vector.broadcast %cst_15 : f32 to vector<16x1xf32>
    %26 = arith.addf %24, %25 : vector<16x1xf32>
    %27 = math.rsqrt %26 : vector<16x1xf32>
    %28 = vector.broadcast %27 : vector<16x1xf32> to vector<16x32xf32>
    %29 = arith.mulf %19, %28 : vector<16x32xf32>
    %c0_16 = arith.constant 0 : index
    %c0_17 = arith.constant 0 : index
    %30 = vector.load %arg6[%c0_16, %c0_17] : memref<1x32xf32, #tpu.memory_space<vmem>>, vector<1x32xf32>
    %31 = vector.broadcast %30 : vector<1x32xf32> to vector<16x32xf32>
    %32 = arith.mulf %29, %31 : vector<16x32xf32>
    %c0_18 = arith.constant 0 : index
    %c0_19 = arith.constant 0 : index
    %33 = vector.load %arg7[%c0_18, %c0_19] : memref<1x32xf32, #tpu.memory_space<vmem>>, vector<1x32xf32>
    %34 = vector.broadcast %33 : vector<1x32xf32> to vector<16x32xf32>
    %35 = arith.addf %32, %34 : vector<16x32xf32>
    %c0_20 = arith.constant 0 : index
    %c0_21 = arith.constant 0 : index
    %36 = vector.load %arg8[%c0_20, %c0_21] : memref<16x32xf32, #tpu.memory_space<vmem>>, vector<16x32xf32>
    tpu.vector_store %arg8[%c0_20, %c0_21], %35 {strides = array<i32>} : memref<16x32xf32, #tpu.memory_space<vmem>>, vector<16x32xf32>,
    return
  }
  func.func @transform_0(%arg0: i32) -> (i32, i32) {
    %c0_i32 = arith.constant 0 : i32
    %c0_i32_0 = arith.constant 0 : i32
    return %arg0, %c0_i32 : i32, i32
  }
  func.func @transform_1(%arg0: i32) -> (i32, i32) {
    %c0_i32 = arith.constant 0 : i32
    %c0_i32_0 = arith.constant 0 : i32
    %c0_i32_1 = arith.constant 0 : i32
    return %c0_i32, %c0_i32_0 : i32, i32
  }
  func.func @transform_2(%arg0: i32) -> (i32, i32) {
    %c0_i32 = arith.constant 0 : i32
    %c0_i32_0 = arith.constant 0 : i32
    %c0_i32_1 = arith.constant 0 : i32
    return %c0_i32, %c0_i32_0 : i32, i32
  }
  func.func @transform_3(%arg0: i32) -> (i32, i32) {
    %c0_i32 = arith.constant 0 : i32
    %c0_i32_0 = arith.constant 0 : i32
    %c0_i32_1 = arith.constant 0 : i32
    return %c0_i32, %c0_i32_0 : i32, i32
  }
  func.func @transform_4(%arg0: i32) -> (i32, i32) {
    %c0_i32 = arith.constant 0 : i32
    %c0_i32_0 = arith.constant 0 : i32
    %c0_i32_1 = arith.constant 0 : i32
    return %c0_i32, %c0_i32_0 : i32, i32
  }
  func.func @transform_5(%arg0: i32) -> (i32, i32) {
    %c0_i32 = arith.constant 0 : i32
    %c0_i32_0 = arith.constant 0 : i32
    %c0_i32_1 = arith.constant 0 : i32
    return %c0_i32, %c0_i32_0 : i32, i32
  }
  func.func @transform_6(%arg0: i32) -> (i32, i32) {
    %c0_i32 = arith.constant 0 : i32
    %c0_i32_0 = arith.constant 0 : i32
    %c0_i32_1 = arith.constant 0 : i32
    return %c0_i32, %c0_i32_0 : i32, i32
  }
  func.func @transform_7(%arg0: i32) -> (i32, i32) {
    %c0_i32 = arith.constant 0 : i32
    %c0_i32_0 = arith.constant 0 : i32
    return %arg0, %c0_i32 : i32, i32
  }
}

module attributes {stable_mosaic.version = 11 : i64} {
  func.func @_mha_block_kernel(%arg0: i32, %arg1: i32, %arg2: memref<1x8x32xf32, #tpu.memory_space<vmem>>, %arg3: memref<1x8x32xf32, #tpu.memory_space<vmem>>, %arg4: memref<32x32xf32, #tpu.memory_space<vmem>>, %arg5: memref<1x32xf32, #tpu.memory_space<vmem>>, %arg6: memref<32x64xf32, #tpu.memory_space<vmem>>, %arg7: memref<1x64xf32, #tpu.memory_space<vmem>>, %arg8: memref<32x32xf32, #tpu.memory_space<vmem>>, %arg9: memref<1x32xf32, #tpu.memory_space<vmem>>, %arg10: memref<1x32xf32, #tpu.memory_space<vmem>>, %arg11: memref<1x32xf32, #tpu.memory_space<vmem>>, %arg12: memref<1x8x32xf32, #tpu.memory_space<vmem>>) attributes {dimension_semantics = [#tpu.dimension_semantics<parallel>, #tpu.dimension_semantics<parallel>], iteration_bounds = array<i64: 2, 1>, scalar_prefetch = 0 : i64, scratch_operands = 0 : i64, tpu.core_type = #tpu.core_type<tc>, window_params = [{transform_indices = @transform_0, window_bounds = array<i64: 1, 8, 32>}, {transform_indices = @transform_1, window_bounds = array<i64: 1, 8, 32>}, {pipeline_mode = #tpu.pipeline_mode<synchronous>, transform_indices = @transform_2, window_bounds = array<i64: 32, 32>}, {pipeline_mode = #tpu.pipeline_mode<synchronous>, transform_indices = @transform_3, window_bounds = array<i64: 1, 32>}, {pipeline_mode = #tpu.pipeline_mode<synchronous>, transform_indices = @transform_4, window_bounds = array<i64: 32, 64>}, {pipeline_mode = #tpu.pipeline_mode<synchronous>, transform_indices = @transform_5, window_bounds = array<i64: 1, 64>}, {pipeline_mode = #tpu.pipeline_mode<synchronous>, transform_indices = @transform_6, window_bounds = array<i64: 32, 32>}, {pipeline_mode = #tpu.pipeline_mode<synchronous>, transform_indices = @transform_7, window_bounds = array<i64: 1, 32>}, {pipeline_mode = #tpu.pipeline_mode<synchronous>, transform_indices = @transform_8, window_bounds = array<i64: 1, 32>}, {pipeline_mode = #tpu.pipeline_mode<synchronous>, transform_indices = @transform_9, window_bounds = array<i64: 1, 32>}, {transform_indices = @transform_10, window_bounds = array<i64: 1, 8, 32>}]} {
    %c0 = arith.constant 0 : index
    %c0_0 = arith.constant 0 : index
    %c0_1 = arith.constant 0 : index
    %0 = vector.load %arg2[%c0, %c0_0, %c0_1] : memref<1x8x32xf32, #tpu.memory_space<vmem>>, vector<1x8x32xf32>
    %1 = vector.shape_cast %0 : vector<1x8x32xf32> to vector<8x32xf32>
    %c0_2 = arith.constant 0 : index
    %c0_3 = arith.constant 0 : index
    %c0_4 = arith.constant 0 : index
    %2 = vector.load %arg3[%c0_2, %c0_3, %c0_4] : memref<1x8x32xf32, #tpu.memory_space<vmem>>, vector<1x8x32xf32>
    %3 = vector.shape_cast %2 : vector<1x8x32xf32> to vector<8x32xf32>
    %c0_5 = arith.constant 0 : index
    %c0_6 = arith.constant 0 : index
    %4 = vector.load %arg4[%c0_5, %c0_6] : memref<32x32xf32, #tpu.memory_space<vmem>>, vector<32x32xf32>
    %cst = arith.constant dense<0.000000e+00> : vector<8x32xf32>
    %5 = tpu.matmul %1, %4, %cst {dimension_numbers = #tpu.dot_dimension_numbers<[1], [0], [0], [1], [0, 0, 1, 1], [], []>} : vector<8x32xf32>, vector<32x32xf32>, vector<8x32xf32> -> vector<8x32xf32>
    %c0_7 = arith.constant 0 : index
    %c0_8 = arith.constant 0 : index
    %6 = vector.load %arg5[%c0_7, %c0_8] : memref<1x32xf32, #tpu.memory_space<vmem>>, vector<1x32xf32>
    %7 = vector.broadcast %6 : vector<1x32xf32> to vector<8x32xf32>
    %8 = arith.addf %5, %7 : vector<8x32xf32>
    %c0_9 = arith.constant 0 : index
    %c0_10 = arith.constant 0 : index
    %9 = vector.load %arg6[%c0_9, %c0_10] : memref<32x64xf32, #tpu.memory_space<vmem>>, vector<32x64xf32>
    %cst_11 = arith.constant dense<0.000000e+00> : vector<8x64xf32>
    %10 = tpu.matmul %3, %9, %cst_11 {dimension_numbers = #tpu.dot_dimension_numbers<[1], [0], [0], [1], [0, 0, 1, 1], [], []>} : vector<8x32xf32>, vector<32x64xf32>, vector<8x64xf32> -> vector<8x64xf32>
    %c0_12 = arith.constant 0 : index
    %c0_13 = arith.constant 0 : index
    %11 = vector.load %arg7[%c0_12, %c0_13] : memref<1x64xf32, #tpu.memory_space<vmem>>, vector<1x64xf32>
    %12 = vector.broadcast %11 : vector<1x64xf32> to vector<8x64xf32>
    %13 = arith.addf %10, %12 : vector<8x64xf32>
    %14 = vector.extract_strided_slice %13 {offsets = [0, 0], sizes = [8, 32], strides = [1, 1]} : vector<8x64xf32> to vector<8x32xf32>
    %15 = vector.extract_strided_slice %13 {offsets = [0, 32], sizes = [8, 32], strides = [1, 1]} : vector<8x64xf32> to vector<8x32xf32>
    %16 = vector.extract_strided_slice %8 {offsets = [0, 0], sizes = [8, 8], strides = [1, 1]} : vector<8x32xf32> to vector<8x8xf32>
    %17 = vector.extract_strided_slice %14 {offsets = [0, 0], sizes = [8, 8], strides = [1, 1]} : vector<8x32xf32> to vector<8x8xf32>
    %18 = vector.extract_strided_slice %15 {offsets = [0, 0], sizes = [8, 8], strides = [1, 1]} : vector<8x32xf32> to vector<8x8xf32>
    %cst_14 = arith.constant dense<0.000000e+00> : vector<8x8xf32>
    %19 = tpu.matmul %16, %17, %cst_14 {dimension_numbers = #tpu.dot_dimension_numbers<[1], [1], [0], [0], [0, 0, 1, 0], [], []>} : vector<8x8xf32>, vector<8x8xf32>, vector<8x8xf32> -> vector<8x8xf32>
    %cst_15 = arith.constant 0.353553385 : f32
    %20 = vector.broadcast %cst_15 : f32 to vector<8x8xf32>
    %21 = arith.mulf %19, %20 : vector<8x8xf32>
    %cst_16 = arith.constant dense<0xFF800000> : vector<8xf32>
    %22 = vector.multi_reduction <maximumf>, %21, %cst_16 [1] : vector<8x8xf32> to vector<8xf32>
    %23 = vector.shape_cast %22 : vector<8xf32> to vector<8x1xf32>
    %24 = vector.broadcast %23 : vector<8x1xf32> to vector<8x8xf32>
    %25 = arith.subf %21, %24 : vector<8x8xf32>
    %26 = math.exp %25 : vector<8x8xf32>
    %cst_17 = arith.constant dense<0.000000e+00> : vector<8xf32>
    %27 = vector.multi_reduction <add>, %26, %cst_17 [1] : vector<8x8xf32> to vector<8xf32>
    %28 = vector.shape_cast %27 : vector<8xf32> to vector<8x1xf32>
    %29 = tpu.reciprocal %28 {approx = true} : vector<8x1xf32> -> vector<8x1xf32>
    %30 = vector.broadcast %29 : vector<8x1xf32> to vector<8x8xf32>
    %31 = arith.mulf %26, %30 : vector<8x8xf32>
    %cst_18 = arith.constant dense<0.000000e+00> : vector<8x8xf32>
    %32 = tpu.matmul %31, %18, %cst_18 {dimension_numbers = #tpu.dot_dimension_numbers<[1], [0], [0], [1], [0, 0, 1, 1], [], []>} : vector<8x8xf32>, vector<8x8xf32>, vector<8x8xf32> -> vector<8x8xf32>
    %33 = vector.extract_strided_slice %8 {offsets = [0, 8], sizes = [8, 8], strides = [1, 1]} : vector<8x32xf32> to vector<8x8xf32>
    %34 = vector.extract_strided_slice %14 {offsets = [0, 8], sizes = [8, 8], strides = [1, 1]} : vector<8x32xf32> to vector<8x8xf32>
    %35 = vector.extract_strided_slice %15 {offsets = [0, 8], sizes = [8, 8], strides = [1, 1]} : vector<8x32xf32> to vector<8x8xf32>
    %cst_19 = arith.constant dense<0.000000e+00> : vector<8x8xf32>
    %36 = tpu.matmul %33, %34, %cst_19 {dimension_numbers = #tpu.dot_dimension_numbers<[1], [1], [0], [0], [0, 0, 1, 0], [], []>} : vector<8x8xf32>, vector<8x8xf32>, vector<8x8xf32> -> vector<8x8xf32>
    %cst_20 = arith.constant 0.353553385 : f32
    %37 = vector.broadcast %cst_20 : f32 to vector<8x8xf32>
    %38 = arith.mulf %36, %37 : vector<8x8xf32>
    %cst_21 = arith.constant dense<0xFF800000> : vector<8xf32>
    %39 = vector.multi_reduction <maximumf>, %38, %cst_21 [1] : vector<8x8xf32> to vector<8xf32>
    %40 = vector.shape_cast %39 : vector<8xf32> to vector<8x1xf32>
    %41 = vector.broadcast %40 : vector<8x1xf32> to vector<8x8xf32>
    %42 = arith.subf %38, %41 : vector<8x8xf32>
    %43 = math.exp %42 : vector<8x8xf32>
    %cst_22 = arith.constant dense<0.000000e+00> : vector<8xf32>
    %44 = vector.multi_reduction <add>, %43, %cst_22 [1] : vector<8x8xf32> to vector<8xf32>
    %45 = vector.shape_cast %44 : vector<8xf32> to vector<8x1xf32>
    %46 = tpu.reciprocal %45 {approx = true} : vector<8x1xf32> -> vector<8x1xf32>
    %47 = vector.broadcast %46 : vector<8x1xf32> to vector<8x8xf32>
    %48 = arith.mulf %43, %47 : vector<8x8xf32>
    %cst_23 = arith.constant dense<0.000000e+00> : vector<8x8xf32>
    %49 = tpu.matmul %48, %35, %cst_23 {dimension_numbers = #tpu.dot_dimension_numbers<[1], [0], [0], [1], [0, 0, 1, 1], [], []>} : vector<8x8xf32>, vector<8x8xf32>, vector<8x8xf32> -> vector<8x8xf32>
    %50 = vector.extract_strided_slice %8 {offsets = [0, 16], sizes = [8, 8], strides = [1, 1]} : vector<8x32xf32> to vector<8x8xf32>
    %51 = vector.extract_strided_slice %14 {offsets = [0, 16], sizes = [8, 8], strides = [1, 1]} : vector<8x32xf32> to vector<8x8xf32>
    %52 = vector.extract_strided_slice %15 {offsets = [0, 16], sizes = [8, 8], strides = [1, 1]} : vector<8x32xf32> to vector<8x8xf32>
    %cst_24 = arith.constant dense<0.000000e+00> : vector<8x8xf32>
    %53 = tpu.matmul %50, %51, %cst_24 {dimension_numbers = #tpu.dot_dimension_numbers<[1], [1], [0], [0], [0, 0, 1, 0], [], []>} : vector<8x8xf32>, vector<8x8xf32>, vector<8x8xf32> -> vector<8x8xf32>
    %cst_25 = arith.constant 0.353553385 : f32
    %54 = vector.broadcast %cst_25 : f32 to vector<8x8xf32>
    %55 = arith.mulf %53, %54 : vector<8x8xf32>
    %cst_26 = arith.constant dense<0xFF800000> : vector<8xf32>
    %56 = vector.multi_reduction <maximumf>, %55, %cst_26 [1] : vector<8x8xf32> to vector<8xf32>
    %57 = vector.shape_cast %56 : vector<8xf32> to vector<8x1xf32>
    %58 = vector.broadcast %57 : vector<8x1xf32> to vector<8x8xf32>
    %59 = arith.subf %55, %58 : vector<8x8xf32>
    %60 = math.exp %59 : vector<8x8xf32>
    %cst_27 = arith.constant dense<0.000000e+00> : vector<8xf32>
    %61 = vector.multi_reduction <add>, %60, %cst_27 [1] : vector<8x8xf32> to vector<8xf32>
    %62 = vector.shape_cast %61 : vector<8xf32> to vector<8x1xf32>
    %63 = tpu.reciprocal %62 {approx = true} : vector<8x1xf32> -> vector<8x1xf32>
    %64 = vector.broadcast %63 : vector<8x1xf32> to vector<8x8xf32>
    %65 = arith.mulf %60, %64 : vector<8x8xf32>
    %cst_28 = arith.constant dense<0.000000e+00> : vector<8x8xf32>
    %66 = tpu.matmul %65, %52, %cst_28 {dimension_numbers = #tpu.dot_dimension_numbers<[1], [0], [0], [1], [0, 0, 1, 1], [], []>} : vector<8x8xf32>, vector<8x8xf32>, vector<8x8xf32> -> vector<8x8xf32>
    %67 = vector.extract_strided_slice %8 {offsets = [0, 24], sizes = [8, 8], strides = [1, 1]} : vector<8x32xf32> to vector<8x8xf32>
    %68 = vector.extract_strided_slice %14 {offsets = [0, 24], sizes = [8, 8], strides = [1, 1]} : vector<8x32xf32> to vector<8x8xf32>
    %69 = vector.extract_strided_slice %15 {offsets = [0, 24], sizes = [8, 8], strides = [1, 1]} : vector<8x32xf32> to vector<8x8xf32>
    %cst_29 = arith.constant dense<0.000000e+00> : vector<8x8xf32>
    %70 = tpu.matmul %67, %68, %cst_29 {dimension_numbers = #tpu.dot_dimension_numbers<[1], [1], [0], [0], [0, 0, 1, 0], [], []>} : vector<8x8xf32>, vector<8x8xf32>, vector<8x8xf32> -> vector<8x8xf32>
    %cst_30 = arith.constant 0.353553385 : f32
    %71 = vector.broadcast %cst_30 : f32 to vector<8x8xf32>
    %72 = arith.mulf %70, %71 : vector<8x8xf32>
    %cst_31 = arith.constant dense<0xFF800000> : vector<8xf32>
    %73 = vector.multi_reduction <maximumf>, %72, %cst_31 [1] : vector<8x8xf32> to vector<8xf32>
    %74 = vector.shape_cast %73 : vector<8xf32> to vector<8x1xf32>
    %75 = vector.broadcast %74 : vector<8x1xf32> to vector<8x8xf32>
    %76 = arith.subf %72, %75 : vector<8x8xf32>
    %77 = math.exp %76 : vector<8x8xf32>
    %cst_32 = arith.constant dense<0.000000e+00> : vector<8xf32>
    %78 = vector.multi_reduction <add>, %77, %cst_32 [1] : vector<8x8xf32> to vector<8xf32>
    %79 = vector.shape_cast %78 : vector<8xf32> to vector<8x1xf32>
    %80 = tpu.reciprocal %79 {approx = true} : vector<8x1xf32> -> vector<8x1xf32>
    %81 = vector.broadcast %80 : vector<8x1xf32> to vector<8x8xf32>
    %82 = arith.mulf %77, %81 : vector<8x8xf32>
    %cst_33 = arith.constant dense<0.000000e+00> : vector<8x8xf32>
    %83 = tpu.matmul %82, %69, %cst_33 {dimension_numbers = #tpu.dot_dimension_numbers<[1], [0], [0], [1], [0, 0, 1, 1], [], []>} : vector<8x8xf32>, vector<8x8xf32>, vector<8x8xf32> -> vector<8x8xf32>
    %84 = tpu.concatenate %32, %49, %66, %83 in 1 : vector<8x8xf32>, vector<8x8xf32>, vector<8x8xf32>, vector<8x8xf32> -> vector<8x32xf32>
    %c0_34 = arith.constant 0 : index
    %c0_35 = arith.constant 0 : index
    %85 = vector.load %arg8[%c0_34, %c0_35] : memref<32x32xf32, #tpu.memory_space<vmem>>, vector<32x32xf32>
    %cst_36 = arith.constant dense<0.000000e+00> : vector<8x32xf32>
    %86 = tpu.matmul %84, %85, %cst_36 {dimension_numbers = #tpu.dot_dimension_numbers<[1], [0], [0], [1], [0, 0, 1, 1], [], []>} : vector<8x32xf32>, vector<32x32xf32>, vector<8x32xf32> -> vector<8x32xf32>
    %c0_37 = arith.constant 0 : index
    %c0_38 = arith.constant 0 : index
    %87 = vector.load %arg9[%c0_37, %c0_38] : memref<1x32xf32, #tpu.memory_space<vmem>>, vector<1x32xf32>
    %88 = vector.broadcast %87 : vector<1x32xf32> to vector<8x32xf32>
    %89 = arith.addf %86, %88 : vector<8x32xf32>
    %90 = arith.addf %89, %1 : vector<8x32xf32>
    %cst_39 = arith.constant dense<0.000000e+00> : vector<8xf32>
    %91 = vector.multi_reduction <add>, %90, %cst_39 [1] : vector<8x32xf32> to vector<8xf32>
    %92 = vector.shape_cast %91 : vector<8xf32> to vector<8x1xf32>
    %cst_40 = arith.constant 3.200000e+01 : f32
    %93 = vector.broadcast %cst_40 : f32 to vector<8x1xf32>
    %94 = arith.divf %92, %93 : vector<8x1xf32>
    %95 = vector.broadcast %94 : vector<8x1xf32> to vector<8x32xf32>
    %96 = arith.subf %90, %95 : vector<8x32xf32>
    %97 = arith.mulf %96, %96 : vector<8x32xf32>
    %cst_41 = arith.constant dense<0.000000e+00> : vector<8xf32>
    %98 = vector.multi_reduction <add>, %97, %cst_41 [1] : vector<8x32xf32> to vector<8xf32>
    %99 = vector.shape_cast %98 : vector<8xf32> to vector<8x1xf32>
    %cst_42 = arith.constant 3.200000e+01 : f32
    %100 = vector.broadcast %cst_42 : f32 to vector<8x1xf32>
    %101 = arith.divf %99, %100 : vector<8x1xf32>
    %cst_43 = arith.constant 9.99999974E-6 : f32
    %102 = vector.broadcast %cst_43 : f32 to vector<8x1xf32>
    %103 = arith.addf %101, %102 : vector<8x1xf32>
    %104 = math.rsqrt %103 : vector<8x1xf32>
    %105 = vector.broadcast %104 : vector<8x1xf32> to vector<8x32xf32>
    %106 = arith.mulf %96, %105 : vector<8x32xf32>
    %c0_44 = arith.constant 0 : index
    %c0_45 = arith.constant 0 : index
    %107 = vector.load %arg10[%c0_44, %c0_45] : memref<1x32xf32, #tpu.memory_space<vmem>>, vector<1x32xf32>
    %108 = vector.broadcast %107 : vector<1x32xf32> to vector<8x32xf32>
    %109 = arith.mulf %106, %108 : vector<8x32xf32>
    %c0_46 = arith.constant 0 : index
    %c0_47 = arith.constant 0 : index
    %110 = vector.load %arg11[%c0_46, %c0_47] : memref<1x32xf32, #tpu.memory_space<vmem>>, vector<1x32xf32>
    %111 = vector.broadcast %110 : vector<1x32xf32> to vector<8x32xf32>
    %112 = arith.addf %109, %111 : vector<8x32xf32>
    %c0_48 = arith.constant 0 : index
    %c0_49 = arith.constant 0 : index
    %c0_50 = arith.constant 0 : index
    %113 = vector.load %arg12[%c0_48, %c0_49, %c0_50] : memref<1x8x32xf32, #tpu.memory_space<vmem>>, vector<1x8x32xf32>
    %114 = vector.shape_cast %113 : vector<1x8x32xf32> to vector<8x32xf32>
    %115 = vector.shape_cast %112 : vector<8x32xf32> to vector<1x8x32xf32>
    tpu.vector_store %arg12[%c0_48, %c0_49, %c0_50], %115 {strides = array<i32>} : memref<1x8x32xf32, #tpu.memory_space<vmem>>, vector<1x8x32xf32>,
    return
  }
  func.func @transform_0(%arg0: i32, %arg1: i32) -> (i32, i32, i32) {
    %c0_i32 = arith.constant 0 : i32
    %c0_i32_0 = arith.constant 0 : i32
    return %arg0, %arg1, %c0_i32 : i32, i32, i32
  }
  func.func @transform_1(%arg0: i32, %arg1: i32) -> (i32, i32, i32) {
    %c0_i32 = arith.constant 0 : i32
    %c0_i32_0 = arith.constant 0 : i32
    %c0_i32_1 = arith.constant 0 : i32
    return %arg0, %c0_i32, %c0_i32_0 : i32, i32, i32
  }
  func.func @transform_2(%arg0: i32, %arg1: i32) -> (i32, i32) {
    %c0_i32 = arith.constant 0 : i32
    %c0_i32_0 = arith.constant 0 : i32
    %c0_i32_1 = arith.constant 0 : i32
    return %c0_i32, %c0_i32_0 : i32, i32
  }
  func.func @transform_3(%arg0: i32, %arg1: i32) -> (i32, i32) {
    %c0_i32 = arith.constant 0 : i32
    %c0_i32_0 = arith.constant 0 : i32
    %c0_i32_1 = arith.constant 0 : i32
    return %c0_i32, %c0_i32_0 : i32, i32
  }
  func.func @transform_4(%arg0: i32, %arg1: i32) -> (i32, i32) {
    %c0_i32 = arith.constant 0 : i32
    %c0_i32_0 = arith.constant 0 : i32
    %c0_i32_1 = arith.constant 0 : i32
    return %c0_i32, %c0_i32_0 : i32, i32
  }
  func.func @transform_5(%arg0: i32, %arg1: i32) -> (i32, i32) {
    %c0_i32 = arith.constant 0 : i32
    %c0_i32_0 = arith.constant 0 : i32
    %c0_i32_1 = arith.constant 0 : i32
    return %c0_i32, %c0_i32_0 : i32, i32
  }
  func.func @transform_6(%arg0: i32, %arg1: i32) -> (i32, i32) {
    %c0_i32 = arith.constant 0 : i32
    %c0_i32_0 = arith.constant 0 : i32
    %c0_i32_1 = arith.constant 0 : i32
    return %c0_i32, %c0_i32_0 : i32, i32
  }
  func.func @transform_7(%arg0: i32, %arg1: i32) -> (i32, i32) {
    %c0_i32 = arith.constant 0 : i32
    %c0_i32_0 = arith.constant 0 : i32
    %c0_i32_1 = arith.constant 0 : i32
    return %c0_i32, %c0_i32_0 : i32, i32
  }
  func.func @transform_8(%arg0: i32, %arg1: i32) -> (i32, i32) {
    %c0_i32 = arith.constant 0 : i32
    %c0_i32_0 = arith.constant 0 : i32
    %c0_i32_1 = arith.constant 0 : i32
    return %c0_i32, %c0_i32_0 : i32, i32
  }
  func.func @transform_9(%arg0: i32, %arg1: i32) -> (i32, i32) {
    %c0_i32 = arith.constant 0 : i32
    %c0_i32_0 = arith.constant 0 : i32
    %c0_i32_1 = arith.constant 0 : i32
    return %c0_i32, %c0_i32_0 : i32, i32
  }
  func.func @transform_10(%arg0: i32, %arg1: i32) -> (i32, i32, i32) {
    %c0_i32 = arith.constant 0 : i32
    %c0_i32_0 = arith.constant 0 : i32
    return %arg0, %arg1, %c0_i32 : i32, i32, i32
  }
}

module attributes {stable_mosaic.version = 11 : i64} {
  func.func @_ffn_block_kernel(%arg0: i32, %arg1: memref<16x32xf32, #tpu.memory_space<vmem>>, %arg2: memref<32x64xf32, #tpu.memory_space<vmem>>, %arg3: memref<1x64xf32, #tpu.memory_space<vmem>>, %arg4: memref<64x32xf32, #tpu.memory_space<vmem>>, %arg5: memref<1x32xf32, #tpu.memory_space<vmem>>, %arg6: memref<1x32xf32, #tpu.memory_space<vmem>>, %arg7: memref<1x32xf32, #tpu.memory_space<vmem>>, %arg8: memref<16x32xf32, #tpu.memory_space<vmem>>) attributes {dimension_semantics = [#tpu.dimension_semantics<parallel>], iteration_bounds = array<i64: 1>, scalar_prefetch = 0 : i64, scratch_operands = 0 : i64, tpu.core_type = #tpu.core_type<tc>, window_params = [{transform_indices = @transform_0, window_bounds = array<i64: 16, 32>}, {pipeline_mode = #tpu.pipeline_mode<synchronous>, transform_indices = @transform_1, window_bounds = array<i64: 32, 64>}, {pipeline_mode = #tpu.pipeline_mode<synchronous>, transform_indices = @transform_2, window_bounds = array<i64: 1, 64>}, {pipeline_mode = #tpu.pipeline_mode<synchronous>, transform_indices = @transform_3, window_bounds = array<i64: 64, 32>}, {pipeline_mode = #tpu.pipeline_mode<synchronous>, transform_indices = @transform_4, window_bounds = array<i64: 1, 32>}, {pipeline_mode = #tpu.pipeline_mode<synchronous>, transform_indices = @transform_5, window_bounds = array<i64: 1, 32>}, {pipeline_mode = #tpu.pipeline_mode<synchronous>, transform_indices = @transform_6, window_bounds = array<i64: 1, 32>}, {transform_indices = @transform_7, window_bounds = array<i64: 16, 32>}]} {
    %c0 = arith.constant 0 : index
    %c0_0 = arith.constant 0 : index
    %0 = vector.load %arg1[%c0, %c0_0] : memref<16x32xf32, #tpu.memory_space<vmem>>, vector<16x32xf32>
    %c0_1 = arith.constant 0 : index
    %c0_2 = arith.constant 0 : index
    %1 = vector.load %arg2[%c0_1, %c0_2] : memref<32x64xf32, #tpu.memory_space<vmem>>, vector<32x64xf32>
    %cst = arith.constant dense<0.000000e+00> : vector<16x64xf32>
    %2 = tpu.matmul %0, %1, %cst {dimension_numbers = #tpu.dot_dimension_numbers<[1], [0], [0], [1], [0, 0, 1, 1], [], []>} : vector<16x32xf32>, vector<32x64xf32>, vector<16x64xf32> -> vector<16x64xf32>
    %c0_3 = arith.constant 0 : index
    %c0_4 = arith.constant 0 : index
    %3 = vector.load %arg3[%c0_3, %c0_4] : memref<1x64xf32, #tpu.memory_space<vmem>>, vector<1x64xf32>
    %4 = vector.broadcast %3 : vector<1x64xf32> to vector<16x64xf32>
    %5 = arith.addf %2, %4 : vector<16x64xf32>
    %cst_5 = arith.constant 0.000000e+00 : f32
    %6 = vector.broadcast %cst_5 : f32 to vector<16x64xf32>
    %7 = arith.maximumf %5, %6 : vector<16x64xf32>
    %c0_6 = arith.constant 0 : index
    %c0_7 = arith.constant 0 : index
    %8 = vector.load %arg4[%c0_6, %c0_7] : memref<64x32xf32, #tpu.memory_space<vmem>>, vector<64x32xf32>
    %cst_8 = arith.constant dense<0.000000e+00> : vector<16x32xf32>
    %9 = tpu.matmul %7, %8, %cst_8 {dimension_numbers = #tpu.dot_dimension_numbers<[1], [0], [0], [1], [0, 0, 1, 1], [], []>} : vector<16x64xf32>, vector<64x32xf32>, vector<16x32xf32> -> vector<16x32xf32>
    %c0_9 = arith.constant 0 : index
    %c0_10 = arith.constant 0 : index
    %10 = vector.load %arg5[%c0_9, %c0_10] : memref<1x32xf32, #tpu.memory_space<vmem>>, vector<1x32xf32>
    %11 = vector.broadcast %10 : vector<1x32xf32> to vector<16x32xf32>
    %12 = arith.addf %9, %11 : vector<16x32xf32>
    %13 = arith.addf %12, %0 : vector<16x32xf32>
    %cst_11 = arith.constant dense<0.000000e+00> : vector<16xf32>
    %14 = vector.multi_reduction <add>, %13, %cst_11 [1] : vector<16x32xf32> to vector<16xf32>
    %15 = vector.shape_cast %14 : vector<16xf32> to vector<16x1xf32>
    %cst_12 = arith.constant 3.200000e+01 : f32
    %16 = vector.broadcast %cst_12 : f32 to vector<16x1xf32>
    %17 = arith.divf %15, %16 : vector<16x1xf32>
    %18 = vector.broadcast %17 : vector<16x1xf32> to vector<16x32xf32>
    %19 = arith.subf %13, %18 : vector<16x32xf32>
    %20 = arith.mulf %19, %19 : vector<16x32xf32>
    %cst_13 = arith.constant dense<0.000000e+00> : vector<16xf32>
    %21 = vector.multi_reduction <add>, %20, %cst_13 [1] : vector<16x32xf32> to vector<16xf32>
    %22 = vector.shape_cast %21 : vector<16xf32> to vector<16x1xf32>
    %cst_14 = arith.constant 3.200000e+01 : f32
    %23 = vector.broadcast %cst_14 : f32 to vector<16x1xf32>
    %24 = arith.divf %22, %23 : vector<16x1xf32>
    %cst_15 = arith.constant 9.99999974E-6 : f32
    %25 = vector.broadcast %cst_15 : f32 to vector<16x1xf32>
    %26 = arith.addf %24, %25 : vector<16x1xf32>
    %27 = math.rsqrt %26 : vector<16x1xf32>
    %28 = vector.broadcast %27 : vector<16x1xf32> to vector<16x32xf32>
    %29 = arith.mulf %19, %28 : vector<16x32xf32>
    %c0_16 = arith.constant 0 : index
    %c0_17 = arith.constant 0 : index
    %30 = vector.load %arg6[%c0_16, %c0_17] : memref<1x32xf32, #tpu.memory_space<vmem>>, vector<1x32xf32>
    %31 = vector.broadcast %30 : vector<1x32xf32> to vector<16x32xf32>
    %32 = arith.mulf %29, %31 : vector<16x32xf32>
    %c0_18 = arith.constant 0 : index
    %c0_19 = arith.constant 0 : index
    %33 = vector.load %arg7[%c0_18, %c0_19] : memref<1x32xf32, #tpu.memory_space<vmem>>, vector<1x32xf32>
    %34 = vector.broadcast %33 : vector<1x32xf32> to vector<16x32xf32>
    %35 = arith.addf %32, %34 : vector<16x32xf32>
    %c0_20 = arith.constant 0 : index
    %c0_21 = arith.constant 0 : index
    %36 = vector.load %arg8[%c0_20, %c0_21] : memref<16x32xf32, #tpu.memory_space<vmem>>, vector<16x32xf32>
    tpu.vector_store %arg8[%c0_20, %c0_21], %35 {strides = array<i32>} : memref<16x32xf32, #tpu.memory_space<vmem>>, vector<16x32xf32>,
    return
  }
  func.func @transform_0(%arg0: i32) -> (i32, i32) {
    %c0_i32 = arith.constant 0 : i32
    %c0_i32_0 = arith.constant 0 : i32
    return %arg0, %c0_i32 : i32, i32
  }
  func.func @transform_1(%arg0: i32) -> (i32, i32) {
    %c0_i32 = arith.constant 0 : i32
    %c0_i32_0 = arith.constant 0 : i32
    %c0_i32_1 = arith.constant 0 : i32
    return %c0_i32, %c0_i32_0 : i32, i32
  }
  func.func @transform_2(%arg0: i32) -> (i32, i32) {
    %c0_i32 = arith.constant 0 : i32
    %c0_i32_0 = arith.constant 0 : i32
    %c0_i32_1 = arith.constant 0 : i32
    return %c0_i32, %c0_i32_0 : i32, i32
  }
  func.func @transform_3(%arg0: i32) -> (i32, i32) {
    %c0_i32 = arith.constant 0 : i32
    %c0_i32_0 = arith.constant 0 : i32
    %c0_i32_1 = arith.constant 0 : i32
    return %c0_i32, %c0_i32_0 : i32, i32
  }
  func.func @transform_4(%arg0: i32) -> (i32, i32) {
    %c0_i32 = arith.constant 0 : i32
    %c0_i32_0 = arith.constant 0 : i32
    %c0_i32_1 = arith.constant 0 : i32
    return %c0_i32, %c0_i32_0 : i32, i32
  }
  func.func @transform_5(%arg0: i32) -> (i32, i32) {
    %c0_i32 = arith.constant 0 : i32
    %c0_i32_0 = arith.constant 0 : i32
    %c0_i32_1 = arith.constant 0 : i32
    return %c0_i32, %c0_i32_0 : i32, i32
  }
  func.func @transform_6(%arg0: i32) -> (i32, i32) {
    %c0_i32 = arith.constant 0 : i32
    %c0_i32_0 = arith.constant 0 : i32
    %c0_i32_1 = arith.constant 0 : i32
    return %c0_i32, %c0_i32_0 : i32, i32
  }
  func.func @transform_7(%arg0: i32) -> (i32, i32) {
    %c0_i32 = arith.constant 0 : i32
    %c0_i32_0 = arith.constant 0 : i32
    return %arg0, %c0_i32 : i32, i32
  }
}

</mosaic_0001>

<bundles_post_ra>
// kernel: multi_model_decoder.11
= control target key start
LH: loop header
LB: loop body
LE: loop exit
PB: predicated region body
PF: predicated region fallthrough
CT: control target
= control target key end

     0   :  { %vm40_vm0 = vcmask 261120   ;;  %s512_s0 = inlined_call_operand.vmem [shape: f32[16,32], index: 0, kind: input, shape index: {}]   ;;  %s513_s1 = inlined_call_operand.vmem [shape: f32[32,64], index: 1, kind: input, shape index: {}]   ;;  %s514_s2 = inlined_call_operand.vmem [shape: f32[1,64], index: 2, kind: input, shape index: {}]   ;;  %s515_s3 = inlined_call_operand.vmem [shape: f32[64,32], index: 3, kind: input, shape index: {}]   ;;  %s516_s4 = inlined_call_operand.vmem [shape: f32[1,32], index: 4, kind: input, shape index: {}]   ;;  %s517_s5 = inlined_call_operand.vmem [shape: f32[1,32], index: 5, kind: input, shape index: {}]   ;;  %s518_s6 = inlined_call_operand.vmem [shape: f32[1,32], index: 6, kind: input, shape index: {}]   ;;  %s519_s7 = inlined_call_operand.hbm [shape: f32[16,32], index: 7, kind: output, shape index: {}]  }
   0x1   :  { %v29_v0 = vld [vmem:[%s513_s1] sm:$0xff]  ;;  %v30_v1 = vld [vmem:[%s513_s1 + $0x8] sm:$0xff]  ;;  %v31_v2 = vld [vmem:[%s513_s1 + $0x10] sm:$0xff] }
   0x2   :  { %v340_v3 = vpack.c.bf16 %v30_v1, %v29_v0  ;;  %v32_v4 = vld [vmem:[%s513_s1 + $0x18] sm:$0xff]  ;;  %v27_v5 = vld [vmem:[%s512_s0] sm:$0xff]  ;;  %v125_v8 = vld [vmem:[%s515_s3 + $0x8] sm:$0xff] }
   0x3   :  { %v344_v6 = vpack.c.bf16 %v32_v4, %v31_v2  ;;  %318 = vmatprep.mubr.msk.f32.mxu0 %vm40_vm0, %v27_v5  ;;  %v124_v7 = vld [vmem:[%s515_s3] sm:$0xff]  ;;  %v126_v9 = vld [vmem:[%s515_s3 + $0x10] sm:$0xff]  ;;  %v127_v11 = vld [vmem:[%s515_s3 + $0x18] sm:$0xff] }
   0x4   :  { %341 = vmatprep.subr.bf16.mxu0 %v340_v3  ;;  %v348_v10 = vpack.c.bf16 %v125_v8, %v124_v7  ;;  %v352_v12 = vpack.c.bf16 %v127_v11, %v126_v9  ;;  %v128_v13 = vld [vmem:[%s515_s3 + $0x20] sm:$0xff]  ;;  %v129_v14 = vld [vmem:[%s515_s3 + $0x28] sm:$0xff] }
   0x5   :  { %343 = vmatpush3.bf16.msra.mxu0 %v340_v3 }
   0x6   :  { %12 = vsyncpa [#allocation3], 0  ;;  %345 = vmatprep.subr.bf16.mxu0 %v344_v6  ;;  %349 = vmatprep.subr.bf16.mxu1 %v348_v10  ;;  %v356_v15 = vpack.c.bf16 %v129_v14, %v128_v13  ;;  %v28_v16 = vld [vmem:[%s512_s0 + $0x8] sm:$0xff]  ;;  %v130_v17 = vld [vmem:[%s515_s3 + $0x30] sm:$0xff]  ;;  %vm139_vm1 = vcmask 523264   ;;  %s395_s9 = smov [#allocation2]  }
   0x7   :  { %351 = vmatpush3.bf16.msra.mxu1 %v348_v10  ;;  %v131_v18 = vld [vmem:[%s515_s3 + $0x38] sm:$0xff]  ;;  %v286_v20 = vld [vmem:[%s514_s2] ss:$0 sm:$0xff]  ;;  %s275_s10 = sshll.u32 %s395_s9, 4  ;;  %s276_s10 = int_to_ptr.vmem [resolvable:$true] %s275_s10 }
   0x8   :  { %353 = vmatprep.subr.bf16.mxu1 %v352_v12  ;;  %v360_v19 = vpack.c.bf16 %v131_v18, %v130_v17  ;;  %v289_v27 = vld [vmem:[%s516_s4] ss:$0 sm:$0xff]  ;;  %s371_s11 = scalar_lea.vmem %s276_s10, 256  ;;  %p376_p1 = scmp.lt.s32.totalorder %s276_s10, %s276_s10 }
   0x9   :  { %347 = vmatpush3.bf16.msra.mxu0 %v344_v6  ;;  %v292_v53 = vld [vmem:[%s517_s5] ss:$0 sm:$0xff]  ;;  %p372_p0 = scmp.ne.s32.totalorder %s276_s10, %s371_s11  ;;  %p377_p2 = scmp.lt.s32.totalorder %s371_s11, %s371_s11 }
   0xa   :  { %v293_v55 = vld [vmem:[%s518_s6] ss:$0 sm:$0xff] }
   0xb   :  { %355 = vmatpush3.bf16.msra.mxu1 %v352_v12  ;;  %p378_p3 = por %p377_p2, %p376_p1 }
   0xc   :  { %319 = vmatmul.mubr.msk.f32.vlgmr.msra.gmra.mrb[0].mxu0 %vm40_vm0, %v28_v16  ;;  %357 = vmatprep.subr.bf16.mxu1 %v356_v15 }
   0xd   :  { %p379_p4 = pnand %p378_p3, %p372_p0 }
   0xf   :  { %359 = vmatpush3.bf16.msra.mxu1 %v356_v15 }
  0x10   :  { %361 = vmatprep.subr.bf16.mxu1 %v360_v19 }
  0x13   :  { %363 = vmatpush3.bf16.msra.mxu1 %v360_v19 }
  0xdf   :  { %v320_v21 = vpop.f32.mrb[0].mxu0 }
  0xe0   :  { %v119_v22 = vadd.f32 %v320_v21, %v286_v20  ;;  %v113_v23 = vpop.f32.mrb[1].mxu0 }
  0xe1   :  { %v114_v24 = vadd.f32 %v286_v20, %v113_v23 }
  0xe2   :  { %v123_v26 = vmax.f32 %v119_v22, 0.0 }
  0xe3   :  { %v122_v25 = vmax.f32 %v114_v24, 0.0 }
  0xe5   :  { %337 = vmatprep.mubr.msk.f32.mxu1 %vm139_vm1, %v122_v25 }
  0xe6   :  { %338 = vmatmul.mubr.msk.f32.vlgmr.msra.gmra.mrb[0].mxu1 %vm139_vm1, %v123_v26 }
 0x1b9   :  { %v339_v28 = vpop.f32.mrb[0].mxu1 }
 0x1ba   :  { %v212_v29 = vpop.f32.mrb[1].mxu1  ;;  %v218_v30 = vadd.f32 %v339_v28, %v289_v27 }
 0x1bb   :  { %v213_v31 = vadd.f32 %v289_v27, %v212_v29 }
 0x1bc   :  { %v222_v34 = vadd.f32 %v218_v30, %v28_v16 }
 0x1bd   :  { %v221_v32 = vadd.f32 %v213_v31, %v27_v5 }
 0x1be   :  { %v226_v35 = vsel %vm40_vm0, %v222_v34, 0.0 }
 0x1bf   :  { %v223_v33 = vsel %vm40_vm0, %v221_v32, 0.0 }
 0x1c0   :  { %224 = vadd.xlane.f32.xlu0 %v223_v33 }
 0x1c4   :  { %227 = vadd.xlane.f32.xlu0 %v226_v35 }
 0x24d   :  { %v225_v36 = vpop.xlane.xlu0 %224 }
 0x24e   :  { %v230_v37 = vmul.f32 0.03125, %v225_v36 }
 0x250   :  { %v232_v38 = vsub.f32 %v221_v32, %v230_v37 }
 0x251   :  { %v228_v39 = vpop.xlane.xlu0 %227 }
 0x252   :  { %v231_v40 = vmul.f32 0.03125, %v228_v39  ;;  %v234_v41 = vmul.f32 %v232_v38, %v232_v38 }
 0x254   :  { %v233_v42 = vsub.f32 %v222_v34, %v231_v40  ;;  %v236_v43 = vsel %vm40_vm0, %v234_v41, 0.0 }
 0x255   :  { %237 = vadd.xlane.f32.xlu1 %v236_v43 }
 0x256   :  { %v235_v44 = vmul.f32 %v233_v42, %v233_v42 }
 0x258   :  { %v239_v45 = vsel %vm40_vm0, %v235_v44, 0.0 }
 0x259   :  { %240 = vadd.xlane.f32.xlu1 %v239_v45 }
 0x2e2   :  { %v238_v46 = vpop.xlane.xlu1 %237 }
 0x2e3   :  { %v242_v47 = vmul.f32 0.03125, %v238_v46 }
 0x2e5   :  { %v244_v48 = vadd.f32 1e-05, %v242_v47 }
 0x2e6   :  { %v241_v49 = vpop.xlane.xlu1 %240 }
 0x2e7   :  { %367 = vrsqrt.f32 %v244_v48  ;;  %v243_v50 = vmul.f32 0.03125, %v241_v49 }
 0x2e9   :  { %v245_v51 = vadd.f32 1e-05, %v243_v50 }
 0x2eb   :  { %369 = vrsqrt.f32 %v245_v51 }
 0x2f1   :  { %v368_v52 = vpop.eup %367 }
 0x2f2   :  { %v248_v54 = vmul.f32 %v368_v52, %v232_v38 }
 0x2f4   :  { %v257_v56 = vmul.f32 %v292_v53, %v248_v54 }
 0x2f5   :  { %v370_v57 = vpop.eup %369 }
 0x2f6   :  { %v249_v58 = vmul.f32 %v370_v57, %v233_v42  ;;  %v266_v59 = vadd.f32 %v293_v55, %v257_v56 }
 0x2f8   :  { %v258_v60 = vmul.f32 %v292_v53, %v249_v58  ;;  %268 = vst.msk [vmem:[#allocation2] sm:$0xff] %vm40_vm0, %v266_v59 }
 0x2fa   :  { %v267_v61 = vadd.f32 %v293_v55, %v258_v60 }
 0x2fc   :  { %269 = vst.msk [vmem:[#allocation2 + $0x8] sm:$0xff] %vm40_vm0, %v267_v61 }
 0x2fd   :  { %382 = shalt.err (!%p379_p4)
}
 0x2fe   :  { %s383_s12 = scalar_lea.hbm %s519_s7, 256 }
 0x2ff   :  { %p384_p5 = scmp.ne.s32.totalorder %s519_s7, %s383_s12  ;;  %p387_p6 = scmp.lt.u32.totalorder %s383_s12, %s519_s7 }
 0x301   :  { %p389_p7 = pnand %p387_p6, %p384_p5 }
 0x303   :  { %392 = shalt.err (!%p389_p7)
}
 0x304   :  { %s396_s1 = smov 128   ;;  %s397_s17 = smov 8  }
 0x305   :  { %281 = dma.vmem_to_hbm [thread:$0]  %s276_s10, 256, %s519_s7, [#allocation3], %s396_s1, %s396_s1, %s397_s17  }
 0x306   :  { %393 = dma.done.wait [#allocation3], 256  }
 0x307   :  { %394 = vsyncadd [#allocation3], 4294967040 }
 0x308   :  { %285 = vsyncpa [#allocation3], 1 }

// kernel: multi_model_decoder.8
= control target key start
LH: loop header
LB: loop body
LE: loop exit
PB: predicated region body
PF: predicated region fallthrough
CT: control target
= control target key end

     0   :  { %vm39_vm0 = vcmask 261120   ;;  %vm138_vm1 = vcmask 523264   ;;  %s463_s1 = inlined_call_operand.vmem [shape: f32[32,64], index: 1, kind: input, shape index: {}]   ;;  %s464_s0 = inlined_call_operand.vmem [shape: f32[16,32], index: 0, kind: input, shape index: {}]   ;;  %s465_s3 = inlined_call_operand.vmem [shape: f32[64,32], index: 3, kind: input, shape index: {}]   ;;  %s466_s2 = inlined_call_operand.vmem [shape: f32[1,64], index: 2, kind: input, shape index: {}]   ;;  %s467_s4 = inlined_call_operand.vmem [shape: f32[1,32], index: 4, kind: input, shape index: {}]   ;;  %s468_s5 = inlined_call_operand.vmem [shape: f32[1,32], index: 5, kind: input, shape index: {}]   ;;  %s469_s6 = inlined_call_operand.vmem [shape: f32[1,32], index: 6, kind: input, shape index: {}]   ;;  %s470_s7 = inlined_call_operand.vmem [shape: f32[16,32], index: 7, kind: output, shape index: {}]  }
   0x1   :  { %v28_v0 = vld [vmem:[%s463_s1] sm:$0xff]  ;;  %v29_v1 = vld [vmem:[%s463_s1 + $0x8] sm:$0xff]  ;;  %v30_v2 = vld [vmem:[%s463_s1 + $0x10] sm:$0xff] }
   0x2   :  { %v327_v3 = vpack.c.bf16 %v29_v1, %v28_v0  ;;  %v31_v4 = vld [vmem:[%s463_s1 + $0x18] sm:$0xff]  ;;  %v26_v5 = vld [vmem:[%s464_s0] sm:$0xff]  ;;  %v124_v8 = vld [vmem:[%s465_s3 + $0x8] sm:$0xff] }
   0x3   :  { %v331_v6 = vpack.c.bf16 %v31_v4, %v30_v2  ;;  %305 = vmatprep.mubr.msk.f32.mxu0 %vm39_vm0, %v26_v5  ;;  %v123_v7 = vld [vmem:[%s465_s3] sm:$0xff]  ;;  %v125_v9 = vld [vmem:[%s465_s3 + $0x10] sm:$0xff]  ;;  %v126_v11 = vld [vmem:[%s465_s3 + $0x18] sm:$0xff] }
   0x4   :  { %328 = vmatprep.subr.bf16.mxu0 %v327_v3  ;;  %v335_v10 = vpack.c.bf16 %v124_v8, %v123_v7  ;;  %v339_v12 = vpack.c.bf16 %v126_v11, %v125_v9  ;;  %v127_v13 = vld [vmem:[%s465_s3 + $0x20] sm:$0xff]  ;;  %v128_v14 = vld [vmem:[%s465_s3 + $0x28] sm:$0xff]  ;;  %v129_v17 = vld [vmem:[%s465_s3 + $0x30] sm:$0xff] }
   0x5   :  { %330 = vmatpush3.bf16.msra.mxu0 %v327_v3  ;;  %v343_v15 = vpack.c.bf16 %v128_v14, %v127_v13  ;;  %v27_v16 = vld [vmem:[%s464_s0 + $0x8] sm:$0xff]  ;;  %v130_v18 = vld [vmem:[%s465_s3 + $0x38] sm:$0xff]  ;;  %v273_v20 = vld [vmem:[%s466_s2] ss:$0 sm:$0xff] }
   0x6   :  { %332 = vmatprep.subr.bf16.mxu0 %v331_v6  ;;  %336 = vmatprep.subr.bf16.mxu1 %v335_v10  ;;  %v347_v19 = vpack.c.bf16 %v130_v18, %v129_v17  ;;  %v276_v27 = vld [vmem:[%s467_s4] ss:$0 sm:$0xff] }
   0x7   :  { %338 = vmatpush3.bf16.msra.mxu1 %v335_v10  ;;  %v279_v53 = vld [vmem:[%s468_s5] ss:$0 sm:$0xff] }
   0x8   :  { %340 = vmatprep.subr.bf16.mxu1 %v339_v12  ;;  %v280_v55 = vld [vmem:[%s469_s6] ss:$0 sm:$0xff] }
   0x9   :  { %334 = vmatpush3.bf16.msra.mxu0 %v331_v6 }
   0xb   :  { %342 = vmatpush3.bf16.msra.mxu1 %v339_v12 }
   0xc   :  { %306 = vmatmul.mubr.msk.f32.vlgmr.msra.gmra.mrb[0].mxu0 %vm39_vm0, %v27_v16  ;;  %344 = vmatprep.subr.bf16.mxu1 %v343_v15 }
   0xf   :  { %346 = vmatpush3.bf16.msra.mxu1 %v343_v15 }
  0x10   :  { %348 = vmatprep.subr.bf16.mxu1 %v347_v19 }
  0x13   :  { %350 = vmatpush3.bf16.msra.mxu1 %v347_v19 }
  0xdf   :  { %v307_v21 = vpop.f32.mrb[0].mxu0 }
  0xe0   :  { %v118_v22 = vadd.f32 %v307_v21, %v273_v20  ;;  %v112_v23 = vpop.f32.mrb[1].mxu0 }
  0xe1   :  { %v113_v24 = vadd.f32 %v273_v20, %v112_v23 }
  0xe2   :  { %v122_v26 = vmax.f32 %v118_v22, 0.0 }
  0xe3   :  { %v121_v25 = vmax.f32 %v113_v24, 0.0 }
  0xe5   :  { %324 = vmatprep.mubr.msk.f32.mxu1 %vm138_vm1, %v121_v25 }
  0xe6   :  { %325 = vmatmul.mubr.msk.f32.vlgmr.msra.gmra.mrb[0].mxu1 %vm138_vm1, %v122_v26 }
 0x1b9   :  { %v326_v28 = vpop.f32.mrb[0].mxu1 }
 0x1ba   :  { %v211_v29 = vpop.f32.mrb[1].mxu1  ;;  %v217_v30 = vadd.f32 %v326_v28, %v276_v27 }
 0x1bb   :  { %v212_v31 = vadd.f32 %v276_v27, %v211_v29 }
 0x1bc   :  { %v221_v34 = vadd.f32 %v217_v30, %v27_v16 }
 0x1bd   :  { %v220_v32 = vadd.f32 %v212_v31, %v26_v5 }
 0x1be   :  { %v225_v35 = vsel %vm39_vm0, %v221_v34, 0.0 }
 0x1bf   :  { %v222_v33 = vsel %vm39_vm0, %v220_v32, 0.0 }
 0x1c0   :  { %223 = vadd.xlane.f32.xlu0 %v222_v33 }
 0x1c4   :  { %226 = vadd.xlane.f32.xlu0 %v225_v35 }
 0x24d   :  { %v224_v36 = vpop.xlane.xlu0 %223 }
 0x24e   :  { %v229_v37 = vmul.f32 0.03125, %v224_v36 }
 0x250   :  { %v231_v38 = vsub.f32 %v220_v32, %v229_v37 }
 0x251   :  { %v227_v39 = vpop.xlane.xlu0 %226 }
 0x252   :  { %v230_v40 = vmul.f32 0.03125, %v227_v39  ;;  %v233_v41 = vmul.f32 %v231_v38, %v231_v38 }
 0x254   :  { %v232_v42 = vsub.f32 %v221_v34, %v230_v40  ;;  %v235_v43 = vsel %vm39_vm0, %v233_v41, 0.0 }
 0x255   :  { %236 = vadd.xlane.f32.xlu1 %v235_v43 }
 0x256   :  { %v234_v44 = vmul.f32 %v232_v42, %v232_v42 }
 0x258   :  { %v238_v45 = vsel %vm39_vm0, %v234_v44, 0.0 }
 0x259   :  { %239 = vadd.xlane.f32.xlu1 %v238_v45 }
 0x2e2   :  { %v237_v46 = vpop.xlane.xlu1 %236 }
 0x2e3   :  { %v241_v47 = vmul.f32 0.03125, %v237_v46 }
 0x2e5   :  { %v243_v48 = vadd.f32 1e-05, %v241_v47 }
 0x2e6   :  { %v240_v49 = vpop.xlane.xlu1 %239 }
 0x2e7   :  { %351 = vrsqrt.f32 %v243_v48  ;;  %v242_v50 = vmul.f32 0.03125, %v240_v49 }
 0x2e9   :  { %v244_v51 = vadd.f32 1e-05, %v242_v50 }
 0x2eb   :  { %353 = vrsqrt.f32 %v244_v51 }
 0x2f1   :  { %v352_v52 = vpop.eup %351 }
 0x2f2   :  { %v247_v54 = vmul.f32 %v352_v52, %v231_v38 }
 0x2f4   :  { %v256_v56 = vmul.f32 %v279_v53, %v247_v54 }
 0x2f5   :  { %v354_v57 = vpop.eup %353 }
 0x2f6   :  { %v265_v58 = vadd.f32 %v280_v55, %v256_v56  ;;  %v248_v59 = vmul.f32 %v354_v57, %v232_v42 }
 0x2f8   :  { %267 = vst.msk [vmem:[%s470_s7] sm:$0xff] %vm39_vm0, %v265_v58  ;;  %v257_v60 = vmul.f32 %v279_v53, %v248_v59 }
 0x2fa   :  { %v266_v61 = vadd.f32 %v280_v55, %v257_v60 }
 0x2fc   :  { %268 = vst.msk [vmem:[%s470_s7 + $0x8] sm:$0xff] %vm39_vm0, %v266_v61 }

// kernel: multi_model_decoder.6
= control target key start
LH: loop header
LB: loop body
LE: loop exit
PB: predicated region body
PF: predicated region fallthrough
CT: control target
= control target key end

     0   :  { %s2789_s0 = inlined_call_operand.hbm [shape: f32[2,8,32], index: 0, kind: input, shape index: {}, may-alias: {0,1}]   ;;  %s2790_s1 = inlined_call_operand.hbm [shape: f32[2,8,32], index: 1, kind: input, shape index: {}, may-alias: {0,1}]   ;;  %s2791_s2 = inlined_call_operand.vmem [shape: f32[32,32], index: 2, kind: input, shape index: {}]   ;;  %s2792_s3 = inlined_call_operand.hbm [shape: f32[1,32], index: 3, kind: input, shape index: {}]   ;;  %s2793_s4 = inlined_call_operand.vmem [shape: f32[32,64], index: 4, kind: input, shape index: {}]   ;;  %s2794_s5 = inlined_call_operand.hbm [shape: f32[1,64], index: 5, kind: input, shape index: {}]   ;;  %s2795_s6 = inlined_call_operand.hbm [shape: f32[32,32], index: 6, kind: input, shape index: {}]   ;;  %s2796_s7 = inlined_call_operand.hbm [shape: f32[1,32], index: 7, kind: input, shape index: {}]   ;;  %s2797_s8 = inlined_call_operand.hbm [shape: f32[1,32], index: 8, kind: input, shape index: {}]   ;;  %s2798_s9 = inlined_call_operand.hbm [shape: f32[1,32], index: 9, kind: input, shape index: {}]   ;;  %s2799_s10 = inlined_call_operand.vmem [shape: f32[2,8,32], index: 10, kind: output, shape index: {}]  }
   0x1   :  { %2806 = sst [smem:[#allocation22_spill]] %s2792_s3 }
   0x2   :  { %2807 = sst [smem:[#allocation23_spill]] %s2794_s5 }
   0x3   :  { %2808 = sst [smem:[#allocation24_spill]] %s2795_s6 }
   0x4   :  { %2809 = sst [smem:[#allocation25_spill]] %s2796_s7 }
   0x5   :  { %2810 = sst [smem:[#allocation26_spill]] %s2799_s10 }
   0x6   :  { %15 = vsyncpa [#allocation3], 0 }
   0x7   :  { %17 = vsyncpa [#allocation3 + $0x1], 0 }
   0x8   :  { %18 = vsyncpa [#allocation5], 0 }
   0x9   :  { %20 = vsyncpa [#allocation5 + $0x1], 0 }
   0xa   :  { %21 = vsyncpa [#allocation8], 0 }
   0xb   :  { %22 = vsyncpa [#allocation11], 0 }
   0xc   :  { %23 = vsyncpa [#allocation14], 0  ;;  %s2343_s13 = smov 0   ;;  %s2345_s14 = smov 0  }
   0xd   :  { %s2347_s15 = smov 0   ;;  %s2349_s16 = smov 0  }
   0xe   :  { %s2351_s17 = smov 0   ;;  %s2353_s18 = smov 0  }
   0xf LB: > { %2811 = sst [smem:[#allocation21_spill]] %s2255_s16  ;;  %s2800_s19 = sadd.s32 4294967295, %s2263_s18   ;;  %s2263_s18 = sphi %s2353_s18, %s29_s18   ;;  %s2259_s17 = sphi %s2351_s17, %s2835_s17   ;;  %s2255_s16 = sphi %s2349_s16, %s2834_s16   ;;  %s2251_s15 = sphi %s2347_s15, %s2833_s15   ;;  %s2247_s14 = sphi %s2345_s14, %s2832_s14   ;;  %s2243_s13 = sphi %s2343_s13, %s2831_s13  }
  0x10   : > { %p1645_p0 = scmp.ge.s32.totalorder %s2263_s18, 1  ;;  %p2377_p1 = scmp.eq.s32.totalorder %s2800_s19, 0 }
  0x11   : > { %p296_p2 = scmp.lt.s32.totalorder %s2263_s18, 3  ;;  %s2265_s22 = smov [#allocation6]  }
  0x12   : > { %s2812_s20 = scalar_select %p2377_p1, 1, 0 }
  0x13   : > { %p2382_p3 = pnand %p1645_p0, %p296_p2  ;;  %s312_s23 = sshll.u32 %s2265_s22, 4  ;;  %s313_s23 = int_to_ptr.vmem [resolvable:$true] %s312_s23 }
  0x14   : > { %s2266_s24 = smov [#allocation7]   ;;  %s2267_s27 = smov [#allocation10]  }
  0x15   : > { %s2813_s21 = scalar_select %p2382_p3, 1, 0 }
  0x16   : > { %p1839_p4 = pneg %p2382_p3  ;;  %s326_s25 = sshll.u32 %s2266_s24, 4  ;;  %s2394_s25 = int_to_ptr.vmem [resolvable:$true] %s326_s25 }
  0x17   : > { %s350_s28 = sshll.u32 %s2267_s27, 4  ;;  %s2815_s3 = sld [smem:[#allocation22_spill]]  ;;  %s2396_s28 = int_to_ptr.vmem [resolvable:$true] %s350_s28 }
  0x18   : > { %p2390_p5 = pnand %p1839_p4, %p2377_p1 }
  0x1a   : > { %p2406_p7 = pneg %p2390_p5 }
  0x1d   : > { %s1965_s11 = scalar_lea.hbm %s2815_s3, 16 }
  0x1e   : > { %p1966_p6 = scmp.ne.s32.totalorder %s2815_s3, %s1965_s11  ;;  %p1972_p10 = scmp.lt.u32.totalorder %s1965_s11, %s2815_s3 }
  0x20   : > { %p1968_p8 = pnand %p2406_p7, %p1966_p6 }
  0x22   : > { %p1969_p9 = pneg %p1968_p8 }
  0x24   : > { %p1974_p11 = pnand %p1972_p10, %p1969_p9 }
  0x26   : > { %1977 = shalt.err (!%p1974_p11)
}
  0x27   : > { %s1978_s29 = scalar_lea.vmem %s313_s23, 16  ;;  %s1985_s30 = scalar_lea.vmem %s313_s23, 32 }
  0x28   : > { %p1979_p12 = scmp.ne.s32.totalorder %s313_s23, %s1978_s29  ;;  %p1986_p2 = scmp.lt.s32.totalorder %s313_s23, %s313_s23 }
  0x29   : > { %p1987_p4 = scmp.lt.s32.totalorder %s1985_s30, %s1978_s29 }
  0x2a   : > { %p1981_p13 = pnand %p1979_p12, %p2406_p7 }
  0x2b   : > { %p1988_p3 = por %p1987_p4, %p1986_p2 }
  0x2c   : > { %p1982_p0 = pneg %p1981_p13 }
  0x2e   : > { %p1989_p1 = pnand %p1988_p3, %p1982_p0 }
  0x30   : > { %1992 = shalt.err (!%p1989_p1)
}
  0x31   : > { %1842 = dma.hbm_to_vmem [thread:$0]  (!%p2390_p5), %s2815_s3, 16, %s313_s23, [#allocation5]  }
  0x32   : > { %s2817_s5 = sld [smem:[#allocation23_spill]] }
  0x38   : > { %s1993_s27 = scalar_lea.hbm %s2817_s5, 16 }
  0x39   : > { %p1994_p6 = scmp.ne.s32.totalorder %s2817_s5, %s1993_s27  ;;  %p2000_p1 = scmp.lt.u32.totalorder %s1993_s27, %s2817_s5 }
  0x3b   : > { %p1996_p8 = pnand %p1994_p6, %p2406_p7 }
  0x3d   : > { %p1997_p9 = pneg %p1996_p8 }
  0x3f   : > { %p2002_p3 = pnand %p2000_p1, %p1997_p9 }
  0x41   : > { %2005 = shalt.err (!%p2002_p3)
}
  0x42   : > { %s2006_s23 = scalar_lea.vmem %s2394_s25, 16  ;;  %s2013_s10 = scalar_lea.vmem %s2394_s25, 32 }
  0x43   : > { %p2007_p10 = scmp.ne.s32.totalorder %s2394_s25, %s2006_s23  ;;  %p2014_p13 = scmp.lt.s32.totalorder %s2394_s25, %s2394_s25 }
  0x44   : > { %p2015_p0 = scmp.lt.s32.totalorder %s2013_s10, %s2006_s23 }
  0x45   : > { %p2009_p11 = pnand %p2007_p10, %p2406_p7 }
  0x46   : > { %p2016_p2 = por %p2015_p0, %p2014_p13 }
  0x47   : > { %p2010_p12 = pneg %p2009_p11 }
  0x49   : > { %p2017_p4 = pnand %p2016_p2, %p2010_p12 }
  0x4b   : > { %2020 = shalt.err (!%p2017_p4)
}
  0x4c   : > { %1845 = dma.hbm_to_vmem [thread:$0]  (!%p2390_p5), %s2817_s5, 16, %s2394_s25, [#allocation8]  }
  0x4d   : > { %s2818_s7 = sld [smem:[#allocation25_spill]] }
  0x53   : > { %s2021_s11 = scalar_lea.hbm %s2818_s7, 16 }
  0x54   : > { %p2022_p6 = scmp.ne.s32.totalorder %s2818_s7, %s2021_s11  ;;  %p2028_p1 = scmp.lt.u32.totalorder %s2021_s11, %s2818_s7 }
  0x56   : > { %p2024_p8 = pnand %p2022_p6, %p2406_p7 }
  0x58   : > { %p2025_p9 = pneg %p2024_p8 }
  0x5a   : > { %p2030_p3 = pnand %p2028_p1, %p2025_p9 }
  0x5c   : > { %2033 = shalt.err (!%p2030_p3)
}
  0x5d   : > { %s2034_s25 = scalar_lea.vmem %s2396_s28, 16  ;;  %s2041_s10 = scalar_lea.vmem %s2396_s28, 32 }
  0x5e   : > { %p2035_p10 = scmp.ne.s32.totalorder %s2396_s28, %s2034_s25  ;;  %p2042_p13 = scmp.lt.s32.totalorder %s2396_s28, %s2396_s28 }
  0x5f   : > { %p2043_p0 = scmp.lt.s32.totalorder %s2041_s10, %s2034_s25 }
  0x60   : > { %p2037_p11 = pnand %p2035_p10, %p2406_p7 }
  0x61   : > { %p2044_p2 = por %p2043_p0, %p2042_p13 }
  0x62   : > { %p2038_p12 = pneg %p2037_p11 }
  0x64   : > { %p2045_p4 = pnand %p2044_p2, %p2038_p12 }
  0x66   : > { %2048 = shalt.err (!%p2045_p4)
}
  0x67   : > { %1851 = dma.hbm_to_vmem [thread:$0]  (!%p2390_p5), %s2818_s7, 16, %s2396_s28, [#allocation11]  }
  0x68   : > { %s2268_s22 = smov [#allocation9]   ;;  %s2819_s6 = sld [smem:[#allocation24_spill]] }
  0x69   : > { %s336_s19 = sshll.u32 %s2268_s22, 4  ;;  %s337_s19 = int_to_ptr.vmem [resolvable:$true] %s336_s19 }
  0x6e   : > { %s2049_s29 = scalar_lea.hbm %s2819_s6, 512 }
  0x6f   : > { %p2050_p6 = scmp.ne.s32.totalorder %s2819_s6, %s2049_s29  ;;  %p2056_p1 = scmp.lt.u32.totalorder %s2049_s29, %s2819_s6 }
  0x71   : > { %p2052_p8 = pnand %p2050_p6, %p2406_p7 }
  0x73   : > { %p2053_p9 = pneg %p2052_p8 }
  0x75   : > { %p2058_p3 = pnand %p2056_p1, %p2053_p9 }
  0x77   : > { %2061 = shalt.err (!%p2058_p3)
}
  0x78   : > { %s2062_s28 = scalar_lea.vmem %s337_s19, 512  ;;  %p2070_p13 = scmp.lt.s32.totalorder %s337_s19, %s337_s19 }
  0x79   : > { %p2063_p10 = scmp.ne.s32.totalorder %s337_s19, %s2062_s28  ;;  %p2071_p0 = scmp.lt.s32.totalorder %s2062_s28, %s2062_s28 }
  0x7b   : > { %p2065_p11 = pnand %p2063_p10, %p2406_p7  ;;  %p2072_p2 = por %p2071_p0, %p2070_p13 }
  0x7d   : > { %p2066_p12 = pneg %p2065_p11 }
  0x7f   : > { %p2073_p4 = pnand %p2072_p2, %p2066_p12 }
  0x81   : > { %2076 = shalt.err (!%p2073_p4)
}
  0x82   : > { %s2269_s16 = smov 128   ;;  %s2270_s12 = smov 8  }
  0x83   : > { %1848 = dma.hbm_to_vmem [thread:$0]  (!%p2390_p5), %s2819_s6, 512, %s337_s19, [#allocation8], %s2269_s16, %s2269_s16, %s2270_s12  }
  0x84   : > { %s2271_s27 = smov [#allocation12]   ;;  %s2272_s30 = smov [#allocation13]  }
  0x85   : > { %s361_s29 = sshll.u32 %s2271_s27, 4  ;;  %s372_s23 = sshll.u32 %s2272_s30, 4  ;;  %s362_s29 = int_to_ptr.vmem [resolvable:$true] %s361_s29  ;;  %s2488_s23 = int_to_ptr.vmem [resolvable:$true] %s372_s23 }
  0x86   : > { %s2077_s28 = scalar_lea.hbm %s2797_s8, 16 }
  0x87   : > { %p2078_p6 = scmp.ne.s32.totalorder %s2797_s8, %s2077_s28  ;;  %p2084_p1 = scmp.lt.u32.totalorder %s2077_s28, %s2797_s8 }
  0x89   : > { %p2080_p8 = pnand %p2078_p6, %p2406_p7 }
  0x8b   : > { %p2081_p9 = pneg %p2080_p8 }
  0x8d   : > { %p2086_p3 = pnand %p2084_p1, %p2081_p9 }
  0x8f   : > { %2089 = shalt.err (!%p2086_p3)
}
  0x90   : > { %s2090_s16 = scalar_lea.vmem %s362_s29, 16  ;;  %s2097_s12 = scalar_lea.vmem %s362_s29, 32 }
  0x91   : > { %p2091_p10 = scmp.ne.s32.totalorder %s362_s29, %s2090_s16  ;;  %p2098_p13 = scmp.lt.s32.totalorder %s362_s29, %s362_s29 }
  0x92   : > { %p2099_p0 = scmp.lt.s32.totalorder %s2097_s12, %s2090_s16 }
  0x93   : > { %p2093_p11 = pnand %p2091_p10, %p2406_p7 }
  0x94   : > { %p2100_p2 = por %p2099_p0, %p2098_p13 }
  0x95   : > { %p2094_p12 = pneg %p2093_p11 }
  0x97   : > { %p2101_p4 = pnand %p2100_p2, %p2094_p12 }
  0x99   : > { %2104 = shalt.err (!%p2101_p4)
}
  0x9a   : > { %1854 = dma.hbm_to_vmem [thread:$0]  (!%p2390_p5), %s2797_s8, 16, %s362_s29, [#allocation11]  }
  0x9b   : > { %s2105_s30 = scalar_lea.hbm %s2798_s9, 16 }
  0x9c   : > { %p2106_p6 = scmp.ne.s32.totalorder %s2798_s9, %s2105_s30  ;;  %p2112_p1 = scmp.lt.u32.totalorder %s2105_s30, %s2798_s9 }
  0x9e   : > { %p2108_p8 = pnand %p2106_p6, %p2406_p7 }
  0xa0   : > { %p2109_p9 = pneg %p2108_p8 }
  0xa2   : > { %p2114_p3 = pnand %p2112_p1, %p2109_p9 }
  0xa4   : > { %2117 = shalt.err (!%p2114_p3)
}
  0xa5   : > { %s2118_s29 = scalar_lea.vmem %s2488_s23, 16  ;;  %s2125_s19 = scalar_lea.vmem %s2488_s23, 32 }
  0xa6   : > { %p2119_p10 = scmp.ne.s32.totalorder %s2488_s23, %s2118_s29  ;;  %p2126_p13 = scmp.lt.s32.totalorder %s2488_s23, %s2488_s23 }
  0xa7   : > { %p2127_p0 = scmp.lt.s32.totalorder %s2125_s19, %s2118_s29 }
  0xa8   : > { %p2121_p11 = pnand %p2119_p10, %p2406_p7 }
  0xa9   : > { %p2128_p2 = por %p2127_p0, %p2126_p13 }
  0xaa   : > { %p2122_p12 = pneg %p2121_p11 }
  0xac   : > { %p2129_p4 = pnand %p2128_p2, %p2122_p12 }
  0xae   : > { %2132 = shalt.err (!%p2129_p4)
}
  0xaf   : > { %1857 = dma.hbm_to_vmem [thread:$0]  (!%p2390_p5), %s2798_s9, 16, %s2488_s23, [#allocation14]  }
  0xb0   : > { %s41_s24 = sadd.s32 1, %s2259_s17  ;;  %s50_s26 = sadd.s32 1, %s2251_s15 }
  0xb1   : > { %p43_p7 = scmp.ge.s32.totalorder %s41_s24, 2  ;;  %p57_p6 = scmp.ne.s32.totalorder %s2251_s15, %s2247_s14 }
  0xb2   : > { %p58_p8 = scmp.eq.s32.totalorder %s2263_s18, 0  ;;  %p63_p9 = scmp.ne.s32.totalorder %s2247_s14, %s2243_s13 }
  0xb3   : > { %s2837_s24 = smov (%p43_p7, %s41_s24), 0  ;;  %p2821_p3 = scmp.ne.s32.totalorder %s2812_s20, 0 }
  0xb4   : > { %p2541_p1 = por %p58_p8, %p57_p6  ;;  %s45_s23 = ssub.s32 %s2259_s17, %s2837_s24 }
  0xb5   : > { %p2547_p10 = por %p2821_p3, %p63_p9  ;;  %p1871_p5 = scmp.lt.s32.totalorder %s2263_s18, 2 }
  0xb6   : > { %p48_p11 = scmp.eq.s32.totalorder %s45_s23, 0  ;;  %s383_s11 = sand.u32 1, %s2251_s15  }
  0xb7   : > { %s2822_s5 = scalar_select %p2547_p10, 1, 0 }
  0xb8   : > { %s2555_s27 = sshll.u32 %s383_s11, 3  ;;  %s1654_s30 = sshll.u32 %s2259_s17, 7 }
  0xb9   : > { %s2558_s13 = scalar_select %p48_p11, %s2251_s15, %s50_s26  }
  0xba   : > { %s2564_s28 = scalar_lea.hbm %s2789_s0, %s1654_s30  ;;  %s387_s22 = scalar_lea.vmem [#allocation2], %s2555_s27 }
  0xbb   : > { %s395_s29 = sshll.u32 %s387_s22, 4  ;;  %p2571_p12 = pnand %p1871_p5, %p2541_p1  ;;  %s2567_s29 = int_to_ptr.vmem [resolvable:$true] %s395_s29 }
  0xbc   : > { %s2578_s26 = scalar_lea.hbm %s2790_s1, %s1654_s30  ;;  %s402_s23 = sand.u32 1, %s2263_s18  }
  0xbd   : > { %s384_s25 = scalar_lea.sflag [#allocation3], %s383_s11  ;;  %s2133_s10 = scalar_lea.hbm %s2564_s28, 128 }
  0xbe   : > { %p2134_p13 = scmp.ne.s32.totalorder %s2564_s28, %s2133_s10  ;;  %p2135_p0 = pneg %p2571_p12 }
  0xbf   : > { %s2138_s6 = scalar_lea.hbm %s2789_s0, 256  ;;  %p2139_p7 = scmp.lt.u32.totalorder %s2564_s28, %s2789_s0 }
  0xc0   : > { %p2136_p2 = pnand %p2135_p0, %p2134_p13  ;;  %p2140_p6 = scmp.lt.u32.totalorder %s2138_s6, %s2133_s10 }
  0xc1   : > { %p2142_p9 = scmp.lt.u32.totalorder %s2133_s10, %s2564_s28 }
  0xc2   : > { %p2137_p4 = pneg %p2136_p2  ;;  %p2141_p8 = por %p2140_p6, %p2139_p7 }
  0xc4   : > { %p2143_p1 = por %p2142_p9, %p2141_p8 }
  0xc6   : > { %p2144_p3 = pnand %p2143_p1, %p2137_p4 }
  0xc8   : > { %2147 = shalt.err (!%p2144_p3)
}
  0xc9   : > { %s2148_s11 = scalar_lea.vmem %s2567_s29, 128  ;;  %s2273_s30 = smov [#allocation2]  }
  0xca   : > { %p2149_p5 = scmp.ne.s32.totalorder %s2567_s29, %s2148_s11  ;;  %s2153_s12 = sshll.u32 %s2273_s30, 4  ;;  %s2154_s12 = int_to_ptr.vmem [resolvable:$false] %s2153_s12 }
  0xcb   : > { %s2155_s7 = scalar_lea.vmem %s2154_s12, 256  ;;  %p2156_p2 = scmp.lt.s32.totalorder %s2567_s29, %s2154_s12 }
  0xcc   : > { %p2151_p11 = pnand %p2149_p5, %p2135_p0  ;;  %p2157_p7 = scmp.lt.s32.totalorder %s2155_s7, %s2148_s11 }
  0xce   : > { %p2152_p13 = pneg %p2151_p11  ;;  %p2158_p6 = por %p2157_p7, %p2156_p2 }
  0xd0   : > { %p2159_p8 = pnand %p2158_p6, %p2152_p13 }
  0xd2   : > { %2162 = shalt.err (!%p2159_p8)
}
  0xd3   : > { %1861 = dma.hbm_to_vmem [thread:$0]  (!%p2571_p12), %s2564_s28, 128, %s2567_s29, %s384_s25  }
  0xd4   : > { %s406_s6 = scalar_lea.vmem [#allocation4], %s2555_s27  ;;  %s403_s3 = scalar_lea.sflag [#allocation5], %s402_s23 }
  0xd5   : > { %s413_s10 = sshll.u32 %s406_s6, 4  ;;  %s2163_s22 = scalar_lea.hbm %s2578_s26, 128  ;;  %s414_s10 = int_to_ptr.vmem [resolvable:$true] %s413_s10 }
  0xd6   : > { %p2164_p4 = scmp.ne.s32.totalorder %s2578_s26, %s2163_s22  ;;  %s2168_s30 = scalar_lea.hbm %s2790_s1, 256 }
  0xd7   : > { %p2169_p3 = scmp.lt.u32.totalorder %s2578_s26, %s2790_s1  ;;  %p2170_p5 = scmp.lt.u32.totalorder %s2168_s30, %s2163_s22 }
  0xd8   : > { %p2166_p9 = pnand %p2164_p4, %p2135_p0  ;;  %p2172_p13 = scmp.lt.u32.totalorder %s2163_s22, %s2578_s26 }
  0xd9   : > { %p2171_p11 = por %p2170_p5, %p2169_p3 }
  0xda   : > { %p2167_p1 = pneg %p2166_p9 }
  0xdb   : > { %p2173_p2 = por %p2172_p13, %p2171_p11 }
  0xdd   : > { %p2174_p7 = pnand %p2173_p2, %p2167_p1 }
  0xdf   : > { %2177 = shalt.err (!%p2174_p7)
}
  0xe0   : > { %s2178_s27 = scalar_lea.vmem %s414_s10, 128  ;;  %s2274_s28 = smov [#allocation4]  }
  0xe1   : > { %p2179_p6 = scmp.ne.s32.totalorder %s414_s10, %s2178_s27  ;;  %s2183_s29 = sshll.u32 %s2274_s28, 4  ;;  %s2184_s29 = int_to_ptr.vmem [resolvable:$false] %s2183_s29 }
  0xe2   : > { %s2185_s23 = scalar_lea.vmem %s2184_s29, 256  ;;  %p2186_p9 = scmp.lt.s32.totalorder %s414_s10, %s2184_s29 }
  0xe3   : > { %p2181_p8 = pnand %p2179_p6, %p2135_p0  ;;  %p2187_p10 = scmp.lt.s32.totalorder %s2185_s23, %s2178_s27 }
  0xe5   : > { %p2182_p4 = pneg %p2181_p8  ;;  %p2188_p3 = por %p2187_p10, %p2186_p9 }
  0xe7   : > { %p2189_p5 = pnand %p2188_p3, %p2182_p4 }
  0xe9   : > { %2192 = shalt.err (!%p2189_p5)
}
  0xea   : > { %1864 = dma.hbm_to_vmem [thread:$0]  (!%p2571_p12), %s2578_s26, 128, %s414_s10, %s403_s3  }
  0xeb   : > { %p2824_p1 = scmp.ne.s32.totalorder %s2813_s21, 0 }
  0xec   : > { %s424_s25 = sand.u32 (!%p2824_p1), 1, %s2247_s14   ;;  %p2825_p0 = scmp.ne.s32.totalorder (!%p2824_p1), %s2822_s5, 0 }
  0xed   : > { %422 = sbr.rel (%p2824_p1) target bundleno = 1997 (0x7cd), region = 60  ;;  %s2631_s6 = sshll.u32 (!%p2824_p1), %s424_s25, 3 }
  0xee   : > { %s425_s22 = scalar_lea.sflag (!%p2824_p1), [#allocation3], %s424_s25  ;;  %s428_s16 = scalar_lea.vmem (!%p2824_p1), [#allocation2], %s2631_s6 }
  0xf4   : > { %2218 = dma.done.wait (%p2825_p0), %s425_s22, 128  }
  0xf5   : > { %2220 = vsyncadd (%p2825_p0), %s425_s22, 4294967168  ;;  %s2826_s19 = sadd.s32 4294967295, %s2263_s18   ;;  %s437_s10 = scalar_lea.vmem [#allocation4], %s2631_s6 }
  0xf6   : > { %s433_s26 = sand.u32 1, %s2826_s19  }
  0xf7   : > { %s434_s21 = scalar_lea.sflag [#allocation5], %s433_s26 }
  0xf8   : > { %2222 = dma.done.wait (%p2825_p0), %s434_s21, 128  }
  0xf9   : > { %2224 = vsyncadd (%p2825_p0), %s434_s21, 4294967168  ;;  %p2827_p10 = scmp.ne.s32.totalorder %s2812_s20, 0 }
  0xfb   : > { %2226 = dma.done.wait (%p2827_p10), [#allocation5], 16  }
  0xfc   : > { %2228 = vsyncadd (%p2827_p10), [#allocation5], 4294967280 }
  0xfd   : > { %2230 = dma.done.wait (%p2827_p10), [#allocation8], 528  }
  0xfe   : > { %2232 = vsyncadd (%p2827_p10), [#allocation8], 4294966768 }
  0xff   : > { %2234 = dma.done.wait (%p2827_p10), [#allocation11], 32  }
 0x100   : > { %2236 = vsyncadd (%p2827_p10), [#allocation11], 4294967264 }
 0x101   : > { %2238 = dma.done.wait (%p2827_p10), [#allocation14], 16  }
 0x102   : > { %2240 = vsyncadd (%p2827_p10), [#allocation14], 4294967280  ;;  %v2275_v0 = vmov 0.0|0.0   ;;  %vm2276_vm0 = vmmov 0   ;;  %v2277_v1 = vmov 0.0   ;;  %v599_v2 = vld [vmem:[%s2793_s4] sm:$0xff] }
 0x103   : > { %1799 = vmatprep.subr.bf16.mxu1 %v2275_v0  ;;  %1793 = vmatprep.subr.bf16.mxu0 %v2275_v0  ;;  %v600_v3 = vld [vmem:[%s2793_s4 + $0x8] sm:$0xff]  ;;  %v514_v4 = vld [vmem:[%s2791_s2] sm:$0xff]  ;;  %v601_v7 = vld [vmem:[%s2793_s4 + $0x10] sm:$0xff]  ;;  %vm525_vm1 = vcmask 261120   ;;  %vm683_vm2 = vcmask 64512   ;;  %s2278_s6 = smov 112  }
 0x104   : > { %1739 = vmatprep.mubr.msk.f32.mxu1 %vm2276_vm0, %v2277_v1  ;;  %1728 = vmatprep.mubr.msk.f32.mxu0 %vm2276_vm0, %v2277_v1  ;;  %v1800_v5 = vpack.c.bf16 %v600_v3, %v599_v2  ;;  %v515_v6 = vld [vmem:[%s2791_s2 + $0x8] sm:$0xff]  ;;  %v602_v8 = vld [vmem:[%s2793_s4 + $0x18] sm:$0xff]  ;;  %v516_v10 = vld [vmem:[%s2791_s2 + $0x10] sm:$0xff]  ;;  %s2281_s5 = smov 96   ;;  %s2282_s3 = smov 80   ;;  %vm1359_vm3 = vcmask 130048  }
 0x105   : > { %v1794_v9 = vpack.c.bf16 %v515_v6, %v514_v4  ;;  %v517_v11 = vld [vmem:[%s2791_s2 + $0x18] sm:$0xff]  ;;  %v1803_v12 = vpack.c.bf16 %v602_v8, %v601_v7  ;;  %v513_v14 = vld [vmem:[%s437_s10] sm:$0xff]  ;;  %v1669_v16 = vld [vmem:[#allocation7] ss:$0 sm:$0xff]  ;;  %s2280_s10 = smov 104   ;;  %s2283_s11 = smov 72  }
 0x106   : > { %1801 = vmatpush3.bf16.msra.mxu1 %v1800_v5  ;;  %v1797_v13 = vpack.c.bf16 %v517_v11, %v516_v10  ;;  %v2697_v15 = vld [vmem:[%s428_s16] sm:$0xff]  ;;  %s2279_s16 = smov 120   ;;  %s2284_s20 = smov 88   ;;  %vm1361_vm4 = vcmask 195584  }
 0x107   : > { %1795 = vmatpush3.bf16.msra.mxu0 %v1794_v9  ;;  %1802 = vmatprep.subr.bf16.mxu1 %v2275_v0  ;;  %v1667_v18 = vld [vmem:[#allocation6] ss:$0 sm:$0xff]  ;;  %s2285_s30 = smov 8   ;;  %s2286_s12 = smov 16  }
 0x108   : > { %1796 = vmatprep.subr.bf16.mxu0 %v2275_v0  ;;  %s2287_s7 = smov 24   ;;  %s2828_s27 = sld [smem:[#allocation21_spill]] }
 0x109   : > { %s2829_s25 = sld [smem:[#allocation26_spill]] }
 0x10a   : > { %1804 = vmatpush3.bf16.msra.mxu1 %v1803_v12 }
 0x10b   : > { %1798 = vmatpush3.bf16.msra.mxu0 %v1797_v13  ;;  %1742 = vmatprep.subr.mxu1 %v2277_v1 }
 0x10c   : > { %1752 = vmatprep.subr.mxu0 %v2277_v1 }
 0x10d   : > { %1740 = vmatmul.mubr.msk.f32.vlgmr.msra.gmra.mrb[0].mxu1 %vm525_vm1, %v513_v14 }
 0x10e   : > { %1729 = vmatmul.mubr.msk.f32.vlgmr.msra.gmra.mrb[0].mxu0 %vm525_vm1, %v2697_v15  ;;  %1744 = vmatprep.mubr.msk.f32.mxu1 %vm2276_vm0, %v2277_v1  ;;  %p505_p12 = scmp.lt.s32.totalorder %s2828_s27, 1 }
 0x10f   : > { %1754 = vmatprep.mubr.msk.f32.mxu0 %vm2276_vm0, %v2277_v1 }
 0x110   : > { %s2839_s27 = smov (!%p505_p12, %s2828_s27), 1 }
 0x111   : > { %s1666_s28 = sshll.u32 %s2839_s27, 3 }
 0x112   : > { %s511_s22 = scalar_lea.vmem %s2829_s25, %s1666_s28 }
 0x1e0   : > { %v679_v17 = vpop.f32.mrb[0].mxu1 }
 0x1e1   : > { %v2708_v19 = vadd.f32 %v1669_v16, %v679_v17  ;;  %v1741_v20 = vpop.f32.mrb[1].mxu1  ;;  %v595_v21 = vpop.f32.mrb[0].mxu0 }
 0x1e2   : > { %v1730_v22 = vpop.f32.mrb[1].mxu0  ;;  %v596_v23 = vadd.f32 %v1667_v18, %v595_v21 }
 0x1e3   : > { %1016 = vrot.lane.b32.xlu1 %v2708_v19, %s2278_s6  ;;  %850 = vrot.lane.b32.xlu0 %v2708_v19, %s2279_s16 }
 0x1e4   : > { %1743 = vmatpush3.xpose.msk.msra.mxu1 %vm683_vm2, %v2708_v19 }
 0x1e5   : > { %1747 = vmatprep.subr.mxu1 %v2277_v1 }
 0x1e7   : > { %1745 = vmatmul.mubr.msk.f32.vlgmr.msra.gmra.mrb[2].mxu1 %vm683_vm2, %v596_v23  ;;  %1014 = vrot.lane.b32.xlu1 %v596_v23, %s2278_s6 }
 0x1e8   : > { %848 = vrot.lane.b32.xlu0 %v596_v23, %s2279_s16  ;;  %1749 = vmatprep.mubr.msk.f32.mxu1 %vm2276_vm0, %v2277_v1 }
 0x1eb   : > { %1180 = vrot.lane.b32.xlu1 %v596_v23, %s2280_s10  ;;  %v1363_v23 = vld [vmem:[#allocation9] sm:$0xff] }
 0x1ec   : > { %1182 = vrot.lane.b32.xlu0 %v2708_v19, %s2280_s10 }
 0x255   : > { %v851_v24 = vpop.permute.xlu0 %850  ;;  %v1017_v25 = vpop.permute.xlu1 %1016 }
 0x256   : > { %1753 = vmatpush3.xpose.msk.msra.mxu0 %vm683_vm2, %v851_v24  ;;  %v1364_v24 = vld [vmem:[#allocation9 + $0x8] sm:$0xff] }
 0x257   : > { %1762 = vmatprep.subr.mxu0 %v2277_v1 }
 0x259   : > { %v1015_v27 = vpop.permute.xlu1 %1014 }
 0x25a   : > { %v849_v26 = vpop.permute.xlu0 %848 }
 0x25b   : > { %1755 = vmatmul.mubr.msk.f32.vlgmr.msra.gmra.mrb[2].mxu0 %vm683_vm2, %v849_v26  ;;  %v1365_v26 = vld [vmem:[#allocation9 + $0x10] sm:$0xff] }
 0x25c   : > { %1763 = vmatpush3.xpose.msk.msra.mxu0 %vm683_vm2, %v1017_v25  ;;  %1764 = vmatprep.mubr.msk.f32.mxu0 %vm2276_vm0, %v2277_v1  ;;  %v1806_v25 = vpack.c.bf16 %v1364_v24, %v1363_v23 }
 0x25d   : > { %1772 = vmatprep.subr.mxu0 %v2277_v1  ;;  %v1181_v29 = vpop.permute.xlu1 %1180 }
 0x25e   : > { %v1183_v28 = vpop.permute.xlu0 %1182 }
 0x25f   : > { %1765 = vmatmul.mubr.msk.f32.vlgmr.msra.gmra.mrb[4].mxu0 %vm683_vm2, %v1015_v27  ;;  %v1366_v27 = vld [vmem:[#allocation9 + $0x18] sm:$0xff] }
 0x260   : > { %1773 = vmatpush3.xpose.msk.msra.mxu0 %vm683_vm2, %v1183_v28  ;;  %1774 = vmatprep.mubr.msk.f32.mxu0 %vm2276_vm0, %v2277_v1  ;;  %v1809_v28 = vpack.c.bf16 %v1366_v27, %v1365_v26 }
 0x261   : > { %1805 = vmatprep.subr.bf16.mxu0 %v2275_v0 }
 0x263   : > { %1775 = vmatmul.mubr.msk.f32.vlgmr.msra.gmra.mrb[6].mxu0 %vm683_vm2, %v1181_v29 }
 0x264   : > { %1790 = vmatprep.mubr.msk.f32.mxu0 %vm2276_vm0, %v2277_v1  ;;  %1807 = vmatpush3.bf16.msra.mxu0 %v1806_v25 }
 0x265   : > { %1808 = vmatprep.subr.bf16.mxu0 %v2275_v0 }
 0x268   : > { %1810 = vmatpush3.bf16.msra.mxu0 %v1809_v28 }
 0x2ba   : > { %v756_v30 = vpop.f32.mrb[2].mxu1 }
 0x2bb   : > { %v760_v31 = vmul.f32 0.35355338, %v756_v30  ;;  %v1746_v32 = vpop.f32.mrb[3].mxu1 }
 0x2bd   : > { %v761_v33 = vsel %vm683_vm2, %v760_v31, -inf }
 0x2be   : > { %762 = vmax.xlane.f32.xlu0 %v761_v33 }
 0x32e   : > { %v922_v34 = vpop.f32.mrb[2].mxu0 }
 0x32f   : > { %v926_v35 = vmul.f32 0.35355338, %v922_v34  ;;  %v1756_v36 = vpop.f32.mrb[3].mxu0 }
 0x331   : > { %v927_v37 = vsel %vm683_vm2, %v926_v35, -inf }
 0x332   : > { %928 = vmax.xlane.f32.xlu1 %v927_v37  ;;  %v1088_v38 = vpop.f32.mrb[4].mxu0 }
 0x333   : > { %v1092_v39 = vmul.f32 0.35355338, %v1088_v38  ;;  %v1766_v40 = vpop.f32.mrb[5].mxu0 }
 0x335   : > { %v1093_v41 = vsel %vm683_vm2, %v1092_v39, -inf }
 0x336   : > { %1094 = vmax.xlane.f32.xlu0 %v1093_v41  ;;  %v1254_v42 = vpop.f32.mrb[6].mxu0 }
 0x337   : > { %v1258_v43 = vmul.f32 0.35355338, %v1254_v42  ;;  %v1776_v44 = vpop.f32.mrb[7].mxu0 }
 0x339   : > { %v1259_v45 = vsel %vm683_vm2, %v1258_v43, -inf }
 0x33a   : > { %1260 = vmax.xlane.f32.xlu0 %v1259_v45 }
 0x343   : > { %772 = vrot.lane.b32.xlu1 %v2708_v19, %s2281_s5 }
 0x34b   : > { %v763_v46 = vpop.xlane.xlu0 %762 }
 0x34c   : > { %v764_v47 = vsub.f32 %v760_v31, %v763_v46 }
 0x34e   : > { %v765_v48 = vmul.f32 1.442695, %v764_v47 }
 0x350   : > { %1947 = vpow2.f32 %v765_v48 }
 0x35a   : > { %v1948_v49 = vpop.eup %1947 }
 0x35b   : > { %v767_v50 = vsel %vm683_vm2, %v1948_v49, 0.0 }
 0x367   : > { %768 = vadd.xlane.f32.xlu1 %v767_v50 }
 0x3bf   : > { %v929_v51 = vpop.xlane.xlu1 %928 }
 0x3c0   : > { %v930_v52 = vsub.f32 %v926_v35, %v929_v51 }
 0x3c2   : > { %v931_v53 = vmul.f32 1.442695, %v930_v52 }
 0x3c3   : > { %v773_v54 = vpop.permute.xlu1 %772  ;;  %v1095_v55 = vpop.xlane.xlu0 %1094 }
 0x3c4   : > { %1949 = vpow2.f32 %v931_v53  ;;  %v1096_v56 = vsub.f32 %v1092_v39, %v1095_v55  ;;  %1748 = vmatpush3.msra.mxu1 %v773_v54  ;;  %v1683_v39 = vld [vmem:[#allocation10] ss:$0 sm:$0xff]  ;;  %v1685_v54 = vld [vmem:[#allocation12] ss:$0 sm:$0xff]  ;;  %v1686_v55 = vld [vmem:[#allocation13] ss:$0 sm:$0xff] }
 0x3c5   : > { %1757 = vmatprep.subr.mxu1 %v2277_v1 }
 0x3c6   : > { %v1097_v57 = vmul.f32 1.442695, %v1096_v56 }
 0x3c7   : > { %v1261_v58 = vpop.xlane.xlu0 %1260 }
 0x3c8   : > { %1951 = vpow2.f32 %v1097_v57  ;;  %v1262_v59 = vsub.f32 %v1258_v43, %v1261_v58 }
 0x3ca   : > { %v1263_v60 = vmul.f32 1.442695, %v1262_v59 }
 0x3cc   : > { %1953 = vpow2.f32 %v1263_v60 }
 0x3ce   : > { %v1950_v61 = vpop.eup %1949 }
 0x3cf   : > { %v933_v62 = vsel %vm683_vm2, %v1950_v61, 0.0 }
 0x3d0   : > { %934 = vadd.xlane.f32.xlu0 %v933_v62 }
 0x3d2   : > { %v1952_v63 = vpop.eup %1951 }
 0x3d3   : > { %v1099_v2 = vsel %vm683_vm2, %v1952_v63, 0.0 }
 0x3d4   : > { %1100 = vadd.xlane.f32.xlu1 %v1099_v2 }
 0x3d6   : > { %v1954_v3 = vpop.eup %1953 }
 0x3d7   : > { %v1265_v4 = vsel %vm683_vm2, %v1954_v3, 0.0 }
 0x3d8   : > { %1266 = vadd.xlane.f32.xlu0 %v1265_v4 }
 0x3e5   : > { %1104 = vrot.lane.b32.xlu1 %v2708_v19, %s2282_s3 }
 0x3e9   : > { %1270 = vrot.lane.b32.xlu1 %v2708_v19, %s2283_s11 }
 0x3ee   : > { %938 = vrot.lane.b32.xlu0 %v2708_v19, %s2284_s20 }
 0x3f4   : > { %v769_v5 = vpop.xlane.xlu1 %768 }
 0x3f5   : > { %1955 = vrcp.f32 %v769_v5 }
 0x3ff   : > { %v1956_v6 = vpop.eup %1955 }
 0x400   : > { %v771_v7 = vmul.f32 %v1956_v6, %v1948_v49 }
 0x402   : > { %1750 = vmatmul.mubr.msk.f32.vlgmr.msra.gmra.mrb[4].mxu1 %vm683_vm2, %v771_v7 }
 0x403   : > { %1759 = vmatprep.mubr.msk.f32.mxu1 %vm2276_vm0, %v2277_v1 }
 0x45d   : > { %v935_v8 = vpop.xlane.xlu0 %934 }
 0x45e   : > { %1957 = vrcp.f32 %v935_v8 }
 0x461   : > { %v1101_v9 = vpop.xlane.xlu1 %1100 }
 0x462   : > { %1959 = vrcp.f32 %v1101_v9 }
 0x465   : > { %v1267_v10 = vpop.xlane.xlu0 %1266  ;;  %v1105_v13 = vpop.permute.xlu1 %1104 }
 0x466   : > { %1961 = vrcp.f32 %v1267_v10 }
 0x468   : > { %v1958_v11 = vpop.eup %1957 }
 0x469   : > { %v937_v12 = vmul.f32 %v1958_v11, %v1950_v61  ;;  %v939_v14 = vpop.permute.xlu0 %938  ;;  %v1271_v18 = vpop.permute.xlu1 %1270 }
 0x46a   : > { %1758 = vmatpush3.msra.mxu1 %v939_v14 }
 0x46b   : > { %1760 = vmatmul.mubr.msk.f32.vlgmr.msra.gmra.mrb[6].mxu1 %vm683_vm2, %v937_v12  ;;  %1767 = vmatprep.subr.mxu1 %v2277_v1 }
 0x46c   : > { %v1960_v16 = vpop.eup %1959  ;;  %1768 = vmatpush3.msra.mxu1 %v1105_v13  ;;  %1769 = vmatprep.mubr.msk.f32.mxu1 %vm2276_vm0, %v2277_v1 }
 0x46d   : > { %v1103_v17 = vmul.f32 %v1960_v16, %v1952_v63  ;;  %1777 = vmatprep.subr.mxu1 %v2277_v1 }
 0x46f   : > { %1770 = vmatmul.mubr.msk.f32.vlgmr.msra.gmra.mrb[8].mxu1 %vm683_vm2, %v1103_v17 }
 0x470   : > { %v1962_v19 = vpop.eup %1961  ;;  %1778 = vmatpush3.msra.mxu1 %v1271_v18  ;;  %1779 = vmatprep.mubr.msk.f32.mxu1 %vm2276_vm0, %v2277_v1 }
 0x471   : > { %v1269_v20 = vmul.f32 %v1962_v19, %v1954_v3 }
 0x473   : > { %1780 = vmatmul.mubr.msk.f32.vlgmr.msra.gmra.mrb[10].mxu1 %vm683_vm2, %v1269_v20 }
 0x4d5   : > { %v844_v21 = vpop.f32.mrb[4].mxu1 }
 0x4d6   : > { %v1751_v22 = vpop.f32.mrb[5].mxu1 }
 0x53e   : > { %v1010_v29 = vpop.f32.mrb[6].mxu1 }
 0x53f   : > { %1347 = vrot.lane.b32.xlu0 %v1010_v29, %s2285_s30  ;;  %v1761_v30 = vpop.f32.mrb[7].mxu1 }
 0x542   : > { %v1176_v1 = vpop.f32.mrb[8].mxu1 }
 0x543   : > { %1351 = vrot.lane.b32.xlu1 %v1176_v1, %s2286_s12  ;;  %v1771_v31 = vpop.f32.mrb[9].mxu1 }
 0x546   : > { %v1342_v32 = vpop.f32.mrb[10].mxu1 }
 0x547   : > { %1355 = vrot.lane.b32.xlu0 %v1342_v32, %s2287_s7  ;;  %v1781_v33 = vpop.f32.mrb[11].mxu1 }
 0x5b1   : > { %v1348_v34 = vpop.permute.xlu0 %1347 }
 0x5b2   : > { %v1358_v0 = vsel %vm683_vm2, %v844_v21, %v1348_v34 }
 0x5b5   : > { %v1352_v35 = vpop.permute.xlu1 %1351 }
 0x5b6   : > { %v1360_v36 = vsel %vm1359_vm3, %v1358_v0, %v1352_v35 }
 0x5b9   : > { %v1356_v37 = vpop.permute.xlu0 %1355 }
 0x5ba   : > { %v1362_v38 = vsel %vm1361_vm4, %v1360_v36, %v1356_v37 }
 0x5bb   : > { %1791 = vmatmul.mubr.msk.f32.vlgmr.msra.gmra.mrb[8].mxu0 %vm525_vm1, %v1362_v38 }
 0x68e   : > { %v1443_v40 = vpop.f32.mrb[8].mxu0 }
 0x68f   : > { %v1444_v41 = vadd.f32 %v1683_v39, %v1443_v40  ;;  %v1792_v42 = vpop.f32.mrb[9].mxu0 }
 0x691   : > { %v1447_v43 = vadd.f32 %v1444_v41, %v2697_v15 }
 0x693   : > { %v1448_v44 = vsel %vm525_vm1, %v1447_v43, 0.0 }
 0x694   : > { %1449 = vadd.xlane.f32.xlu1 %v1448_v44 }
 0x721   : > { %v1450_v45 = vpop.xlane.xlu1 %1449 }
 0x722   : > { %v1452_v46 = vmul.f32 0.03125, %v1450_v45 }
 0x724   : > { %v1453_v47 = vsub.f32 %v1447_v43, %v1452_v46 }
 0x726   : > { %v1454_v48 = vmul.f32 %v1453_v47, %v1453_v47 }
 0x728   : > { %v1455_v49 = vsel %vm525_vm1, %v1454_v48, 0.0 }
 0x729   : > { %1456 = vadd.xlane.f32.xlu0 %v1455_v49 }
 0x7b6   : > { %v1457_v50 = vpop.xlane.xlu0 %1456 }
 0x7b7   : > { %v1458_v51 = vmul.f32 0.03125, %v1457_v50 }
 0x7b9   : > { %v1459_v52 = vadd.f32 1e-05, %v1458_v51 }
 0x7bb   : > { %1963 = vrsqrt.f32 %v1459_v52 }
 0x7c5   : > { %v1964_v53 = vpop.eup %1963 }
 0x7c6   : > { %v1461_v15 = vmul.f32 %v1964_v53, %v1453_v47 }
 0x7c8   : > { %v1469_v56 = vmul.f32 %v1685_v54, %v1461_v15 }
 0x7ca   : > { %v1477_v57 = vadd.f32 %v1686_v55, %v1469_v56 }
 0x7cc   : > { %1478 = vst.msk [vmem:[%s511_s22] sm:$0xff] %vm525_vm1, %v1477_v57 }
 0x7cd PF: > { %s29_s18 = sadd.s32 1, %s2263_s18   ;;  %s2830_s19 = smov %s2558_s13 }
 0x7ce   : > { %p26_p11 = scmp.ge.s32.totalorder %s29_s18, 4   ;;  %s2831_s13 = smov %s2247_s14 }
 0x7cf   : > { %s2832_s14 = smov %s2251_s15  ;;  %s2833_s15 = smov %s2830_s19 }
 0x7d0   : > { %s2834_s16 = smov %s2259_s17  ;;  %s2835_s17 = smov %s2837_s24 }
 0x7d1   :  { %28 = sbr.rel (!%p26_p11) target bundleno = 15 (0xf), region = 137 }
 0x7d8   :  { %1504 = vsyncpa [#allocation3], 1 }
 0x7d9   :  { %1506 = vsyncpa [#allocation3 + $0x1], 1 }
 0x7da   :  { %1507 = vsyncpa [#allocation5], 1 }
 0x7db   :  { %1509 = vsyncpa [#allocation5 + $0x1], 1 }
 0x7dc   :  { %1510 = vsyncpa [#allocation8], 1 }
 0x7dd   :  { %1511 = vsyncpa [#allocation11], 1 }
 0x7de   :  { %1512 = vsyncpa [#allocation14], 1 }

// kernel: multi_model_decoder.7
= control target key start
LH: loop header
LB: loop body
LE: loop exit
PB: predicated region body
PF: predicated region fallthrough
CT: control target
= control target key end

     0   :  { %s1755_s13 = smov 0   ;;  %s1757_s14 = smov 0   ;;  %s1928_s0 = inlined_call_operand.vmem [shape: f32[2,8,32], index: 0, kind: input, shape index: {}, may-alias: {0,1}]   ;;  %s1929_s1 = inlined_call_operand.vmem [shape: f32[2,8,32], index: 1, kind: input, shape index: {}, may-alias: {0,1}]   ;;  %s1930_s2 = inlined_call_operand.vmem [shape: f32[32,32], index: 2, kind: input, shape index: {}]   ;;  %s1931_s3 = inlined_call_operand.vmem [shape: f32[1,32], index: 3, kind: input, shape index: {}]   ;;  %s1932_s4 = inlined_call_operand.vmem [shape: f32[32,64], index: 4, kind: input, shape index: {}]   ;;  %s1933_s5 = inlined_call_operand.vmem [shape: f32[1,64], index: 5, kind: input, shape index: {}]   ;;  %s1934_s6 = inlined_call_operand.vmem [shape: f32[32,32], index: 6, kind: input, shape index: {}]   ;;  %s1935_s7 = inlined_call_operand.vmem [shape: f32[1,32], index: 7, kind: input, shape index: {}]   ;;  %s1936_s8 = inlined_call_operand.vmem [shape: f32[1,32], index: 8, kind: input, shape index: {}]   ;;  %s1937_s9 = inlined_call_operand.vmem [shape: f32[1,32], index: 9, kind: input, shape index: {}]   ;;  %s1938_s10 = inlined_call_operand.vmem [shape: f32[2,8,32], index: 10, kind: output, shape index: {}]  }
   0x1   :  { %s1759_s15 = smov 0  }
   0x2 LB: > { %s32_s16 = sadd.s32 1, %s1681_s14  ;;  %p1460_p0 = scmp.ge.s32.totalorder %s1685_s15, 1  ;;  %s1685_s15 = sphi %s1759_s15, %s20_s15   ;;  %s1681_s14 = sphi %s1757_s14, %s1940_s14   ;;  %s1677_s13 = sphi %s1755_s13, %s1939_s13  }
   0x3   : > { %p34_p1 = scmp.ge.s32.totalorder %s32_s16, 2  ;;  %p339_p2 = scmp.lt.s32.totalorder %s1685_s15, 3 }
   0x5   : > { %s1942_s16 = smov (%p34_p1, %s32_s16), 0  ;;  %p340_p3 = pnand %p1460_p0, %p339_p2 }
   0x6   : > { %v490_v0 = vld [vmem:[%s1932_s4] sm:$0xff] (!%p340_p3)  ;;  %v491_v1 = vld [vmem:[%s1932_s4 + $0x8] sm:$0xff] (!%p340_p3)  ;;  %v1687_v3 = vmov (!%p340_p3), 0.0|0.0   ;;  %v492_v6 = vld [vmem:[%s1932_s4 + $0x10] sm:$0xff] (!%p340_p3)  ;;  %p385_p4 = scmp.lt.s32.totalorder (!%p340_p3), %s1677_s13, 1  ;;  %vm1688_vm0 = vmmov (!%p340_p3), 0  }
   0x7   : > { %343 = sbr.rel (%p340_p3) target bundleno = 1746 (0x6d2), region = 60  ;;  %v405_v2 = vld [vmem:[%s1930_s2] sm:$0xff] (!%p340_p3)  ;;  %1596 = vmatprep.subr.bf16.mxu1 (!%p340_p3), %v1687_v3  ;;  %v1597_v4 = vpack.c.bf16 (!%p340_p3), %v491_v1, %v490_v0  ;;  %1590 = vmatprep.subr.bf16.mxu0 (!%p340_p3), %v1687_v3  ;;  %v406_v5 = vld [vmem:[%s1930_s2 + $0x8] sm:$0xff] (!%p340_p3)  ;;  %v493_v7 = vld [vmem:[%s1932_s4 + $0x18] sm:$0xff] (!%p340_p3)  ;;  %v1689_v9 = vmov (!%p340_p3), 0.0   ;;  %vm416_vm1 = vcmask (!%p340_p3), 261120  }
   0x8   : > { %v1591_v8 = vpack.c.bf16 (!%p340_p3), %v406_v5, %v405_v2  ;;  %1536 = vmatprep.mubr.msk.f32.mxu1 (!%p340_p3), %vm1688_vm0, %v1689_v9  ;;  %v407_v10 = vld [vmem:[%s1930_s2 + $0x10] sm:$0xff] (!%p340_p3)  ;;  %v408_v11 = vld [vmem:[%s1930_s2 + $0x18] sm:$0xff] (!%p340_p3)  ;;  %1525 = vmatprep.mubr.msk.f32.mxu0 (!%p340_p3), %vm1688_vm0, %v1689_v9  ;;  %v1600_v12 = vpack.c.bf16 (!%p340_p3), %v493_v7, %v492_v6  ;;  %v1466_v16 = vld [vmem:[%s1933_s5] ss:$0 sm:$0xff] (!%p340_p3)  ;;  %vm574_vm2 = vcmask (!%p340_p3), 64512   ;;  %s1690_s27 = smov (!%p340_p3), 112  }
   0x9   : > { %1598 = vmatpush3.bf16.msra.mxu1 (!%p340_p3), %v1597_v4  ;;  %v1594_v13 = vpack.c.bf16 (!%p340_p3), %v408_v11, %v407_v10  ;;  %v1464_v18 = vld [vmem:[%s1931_s3] ss:$0 sm:$0xff] (!%p340_p3)  ;;  %s1691_s28 = smov (!%p340_p3), 120   ;;  %s1692_s29 = smov (!%p340_p3), 104   ;;  %vm1250_vm3 = vcmask (!%p340_p3), 130048   ;;  %vm1252_vm4 = vcmask (!%p340_p3), 195584  }
   0xa   : > { %1592 = vmatpush3.bf16.msra.mxu0 (!%p340_p3), %v1591_v8  ;;  %1599 = vmatprep.subr.bf16.mxu1 (!%p340_p3), %v1687_v3  ;;  %s1693_s30 = smov (!%p340_p3), 96   ;;  %s1694_s11 = smov (!%p340_p3), 80  }
   0xb   : > { %1593 = vmatprep.subr.bf16.mxu0 (!%p340_p3), %v1687_v3  ;;  %s1695_s12 = smov (!%p340_p3), 72   ;;  %s1696_s18 = smov (!%p340_p3), 88  }
   0xc   : > { %s1697_s26 = smov (!%p340_p3), 8  }
   0xd   : > { %1601 = vmatpush3.bf16.msra.mxu1 (!%p340_p3), %v1600_v12 }
   0xe   : > { %s1944_s13 = smov (!%p385_p4, %s1677_s13), 1  ;;  %1595 = vmatpush3.bf16.msra.mxu0 %v1594_v13  ;;  %1539 = vmatprep.subr.mxu1 %v1689_v9 }
   0xf   : > { %s1809_s17 = sshll.u32 %s1944_s13, 3  ;;  %1549 = vmatprep.subr.mxu0 %v1689_v9 }
  0x10   : > { %s395_s20 = scalar_lea.vmem %s1929_s1, %s1809_s17  ;;  %s391_s23 = scalar_lea.vmem %s1928_s0, %s1809_s17 }
  0x11   : > { %v404_v14 = vld [vmem:[%s395_s20] sm:$0xff]  ;;  %s402_s22 = scalar_lea.vmem %s1938_s10, %s1809_s17 }
  0x12   : > { %v1819_v15 = vld [vmem:[%s391_s23] sm:$0xff]  ;;  %1537 = vmatmul.mubr.msk.f32.vlgmr.msra.gmra.mrb[0].mxu1 %vm416_vm1, %v404_v14 }
  0x13   : > { %1526 = vmatmul.mubr.msk.f32.vlgmr.msra.gmra.mrb[0].mxu0 %vm416_vm1, %v1819_v15  ;;  %1541 = vmatprep.mubr.msk.f32.mxu1 %vm1688_vm0, %v1689_v9 }
  0x14   : > { %1551 = vmatprep.mubr.msk.f32.mxu0 %vm1688_vm0, %v1689_v9 }
  0xe5   : > { %v570_v17 = vpop.f32.mrb[0].mxu1 }
  0xe6   : > { %v1836_v19 = vadd.f32 %v1466_v16, %v570_v17  ;;  %v1538_v20 = vpop.f32.mrb[1].mxu1  ;;  %v486_v21 = vpop.f32.mrb[0].mxu0 }
  0xe7   : > { %v1527_v22 = vpop.f32.mrb[1].mxu0  ;;  %v487_v23 = vadd.f32 %v1464_v18, %v486_v21 }
  0xe8   : > { %907 = vrot.lane.b32.xlu1 %v1836_v19, %s1690_s27  ;;  %741 = vrot.lane.b32.xlu0 %v1836_v19, %s1691_s28 }
  0xe9   : > { %1540 = vmatpush3.xpose.msk.msra.mxu1 %vm574_vm2, %v1836_v19 }
  0xea   : > { %1544 = vmatprep.subr.mxu1 %v1689_v9 }
  0xec   : > { %1542 = vmatmul.mubr.msk.f32.vlgmr.msra.gmra.mrb[2].mxu1 %vm574_vm2, %v487_v23  ;;  %905 = vrot.lane.b32.xlu1 %v487_v23, %s1690_s27  ;;  %s1698_s27 = smov 16  }
  0xed   : > { %739 = vrot.lane.b32.xlu0 %v487_v23, %s1691_s28  ;;  %1546 = vmatprep.mubr.msk.f32.mxu1 %vm1688_vm0, %v1689_v9  ;;  %s1699_s28 = smov 24  }
  0xf0   : > { %1071 = vrot.lane.b32.xlu1 %v487_v23, %s1692_s29  ;;  %v1254_v23 = vld [vmem:[%s1934_s6] sm:$0xff] }
  0xf1   : > { %1073 = vrot.lane.b32.xlu0 %v1836_v19, %s1692_s29 }
 0x15a   : > { %v742_v24 = vpop.permute.xlu0 %741  ;;  %v908_v25 = vpop.permute.xlu1 %907 }
 0x15b   : > { %1550 = vmatpush3.xpose.msk.msra.mxu0 %vm574_vm2, %v742_v24  ;;  %v1255_v24 = vld [vmem:[%s1934_s6 + $0x8] sm:$0xff] }
 0x15c   : > { %1559 = vmatprep.subr.mxu0 %v1689_v9 }
 0x15e   : > { %v906_v27 = vpop.permute.xlu1 %905 }
 0x15f   : > { %v740_v26 = vpop.permute.xlu0 %739 }
 0x160   : > { %1552 = vmatmul.mubr.msk.f32.vlgmr.msra.gmra.mrb[2].mxu0 %vm574_vm2, %v740_v26  ;;  %v1257_v26 = vld [vmem:[%s1934_s6 + $0x18] sm:$0xff] }
 0x161   : > { %1560 = vmatpush3.xpose.msk.msra.mxu0 %vm574_vm2, %v908_v25  ;;  %1561 = vmatprep.mubr.msk.f32.mxu0 %vm1688_vm0, %v1689_v9  ;;  %v1603_v25 = vpack.c.bf16 %v1255_v24, %v1254_v23 }
 0x162   : > { %1569 = vmatprep.subr.mxu0 %v1689_v9  ;;  %v1072_v29 = vpop.permute.xlu1 %1071 }
 0x163   : > { %v1074_v28 = vpop.permute.xlu0 %1073 }
 0x164   : > { %1562 = vmatmul.mubr.msk.f32.vlgmr.msra.gmra.mrb[4].mxu0 %vm574_vm2, %v906_v27 }
 0x165   : > { %1570 = vmatpush3.xpose.msk.msra.mxu0 %vm574_vm2, %v1074_v28  ;;  %1571 = vmatprep.mubr.msk.f32.mxu0 %vm1688_vm0, %v1689_v9 }
 0x166   : > { %1602 = vmatprep.subr.bf16.mxu0 %v1687_v3 }
 0x168   : > { %1572 = vmatmul.mubr.msk.f32.vlgmr.msra.gmra.mrb[6].mxu0 %vm574_vm2, %v1072_v29 }
 0x169   : > { %1587 = vmatprep.mubr.msk.f32.mxu0 %vm1688_vm0, %v1689_v9  ;;  %1604 = vmatpush3.bf16.msra.mxu0 %v1603_v25 }
 0x16a   : > { %1605 = vmatprep.subr.bf16.mxu0 %v1687_v3 }
 0x1bf   : > { %v647_v30 = vpop.f32.mrb[2].mxu1 }
 0x1c0   : > { %v651_v31 = vmul.f32 0.35355338, %v647_v30  ;;  %v1543_v32 = vpop.f32.mrb[3].mxu1 }
 0x1c2   : > { %v652_v33 = vsel %vm574_vm2, %v651_v31, -inf }
 0x1c3   : > { %653 = vmax.xlane.f32.xlu0 %v652_v33 }
 0x233   : > { %v813_v34 = vpop.f32.mrb[2].mxu0 }
 0x234   : > { %v817_v35 = vmul.f32 0.35355338, %v813_v34  ;;  %v1553_v36 = vpop.f32.mrb[3].mxu0 }
 0x236   : > { %v818_v37 = vsel %vm574_vm2, %v817_v35, -inf }
 0x237   : > { %819 = vmax.xlane.f32.xlu1 %v818_v37  ;;  %v979_v38 = vpop.f32.mrb[4].mxu0 }
 0x238   : > { %v983_v39 = vmul.f32 0.35355338, %v979_v38  ;;  %v1563_v40 = vpop.f32.mrb[5].mxu0 }
 0x23a   : > { %v984_v41 = vsel %vm574_vm2, %v983_v39, -inf }
 0x23b   : > { %985 = vmax.xlane.f32.xlu0 %v984_v41  ;;  %v1145_v42 = vpop.f32.mrb[6].mxu0 }
 0x23c   : > { %v1149_v43 = vmul.f32 0.35355338, %v1145_v42  ;;  %v1573_v44 = vpop.f32.mrb[7].mxu0 }
 0x23e   : > { %v1150_v45 = vsel %vm574_vm2, %v1149_v43, -inf }
 0x23f   : > { %1151 = vmax.xlane.f32.xlu0 %v1150_v45 }
 0x248   : > { %663 = vrot.lane.b32.xlu1 %v1836_v19, %s1693_s30 }
 0x250   : > { %v654_v46 = vpop.xlane.xlu0 %653 }
 0x251   : > { %v655_v47 = vsub.f32 %v651_v31, %v654_v46 }
 0x253   : > { %v656_v48 = vmul.f32 1.442695, %v655_v47 }
 0x255   : > { %1645 = vpow2.f32 %v656_v48 }
 0x25f   : > { %v1646_v49 = vpop.eup %1645 }
 0x260   : > { %v658_v50 = vsel %vm574_vm2, %v1646_v49, 0.0 }
 0x26c   : > { %659 = vadd.xlane.f32.xlu1 %v658_v50 }
 0x2c4   : > { %v820_v51 = vpop.xlane.xlu1 %819 }
 0x2c5   : > { %v821_v52 = vsub.f32 %v817_v35, %v820_v51 }
 0x2c7   : > { %v822_v53 = vmul.f32 1.442695, %v821_v52 }
 0x2c8   : > { %v664_v54 = vpop.permute.xlu1 %663  ;;  %v986_v55 = vpop.xlane.xlu0 %985 }
 0x2c9   : > { %1647 = vpow2.f32 %v822_v53  ;;  %v987_v56 = vsub.f32 %v983_v39, %v986_v55  ;;  %1545 = vmatpush3.msra.mxu1 %v664_v54  ;;  %v1480_v39 = vld [vmem:[%s1935_s7] ss:$0 sm:$0xff] }
 0x2ca   : > { %1554 = vmatprep.subr.mxu1 %v1689_v9  ;;  %v1483_v55 = vld [vmem:[%s1937_s9] ss:$0 sm:$0xff] }
 0x2cb   : > { %v988_v57 = vmul.f32 1.442695, %v987_v56 }
 0x2cc   : > { %v1152_v58 = vpop.xlane.xlu0 %1151 }
 0x2cd   : > { %1649 = vpow2.f32 %v988_v57  ;;  %v1153_v59 = vsub.f32 %v1149_v43, %v1152_v58 }
 0x2cf   : > { %v1154_v60 = vmul.f32 1.442695, %v1153_v59 }
 0x2d1   : > { %1651 = vpow2.f32 %v1154_v60 }
 0x2d3   : > { %v1648_v61 = vpop.eup %1647 }
 0x2d4   : > { %v824_v62 = vsel %vm574_vm2, %v1648_v61, 0.0 }
 0x2d5   : > { %825 = vadd.xlane.f32.xlu0 %v824_v62 }
 0x2d7   : > { %v1650_v63 = vpop.eup %1649 }
 0x2d8   : > { %v990_v0 = vsel %vm574_vm2, %v1650_v63, 0.0 }
 0x2d9   : > { %991 = vadd.xlane.f32.xlu1 %v990_v0 }
 0x2db   : > { %v1652_v1 = vpop.eup %1651 }
 0x2dc   : > { %v1156_v2 = vsel %vm574_vm2, %v1652_v1, 0.0 }
 0x2dd   : > { %1157 = vadd.xlane.f32.xlu0 %v1156_v2 }
 0x2ea   : > { %995 = vrot.lane.b32.xlu1 %v1836_v19, %s1694_s11 }
 0x2ee   : > { %1161 = vrot.lane.b32.xlu1 %v1836_v19, %s1695_s12 }
 0x2f3   : > { %829 = vrot.lane.b32.xlu0 %v1836_v19, %s1696_s18 }
 0x2f9   : > { %v660_v4 = vpop.xlane.xlu1 %659 }
 0x2fa   : > { %1653 = vrcp.f32 %v660_v4 }
 0x304   : > { %v1654_v5 = vpop.eup %1653 }
 0x305   : > { %v662_v6 = vmul.f32 %v1654_v5, %v1646_v49 }
 0x307   : > { %1547 = vmatmul.mubr.msk.f32.vlgmr.msra.gmra.mrb[4].mxu1 %vm574_vm2, %v662_v6 }
 0x308   : > { %1556 = vmatprep.mubr.msk.f32.mxu1 %vm1688_vm0, %v1689_v9 }
 0x362   : > { %v826_v7 = vpop.xlane.xlu0 %825 }
 0x363   : > { %1655 = vrcp.f32 %v826_v7 }
 0x366   : > { %v992_v8 = vpop.xlane.xlu1 %991 }
 0x367   : > { %1657 = vrcp.f32 %v992_v8 }
 0x36a   : > { %v1158_v10 = vpop.xlane.xlu0 %1157  ;;  %v996_v13 = vpop.permute.xlu1 %995 }
 0x36b   : > { %1659 = vrcp.f32 %v1158_v10 }
 0x36d   : > { %v1656_v11 = vpop.eup %1655 }
 0x36e   : > { %v828_v12 = vmul.f32 %v1656_v11, %v1648_v61  ;;  %v830_v14 = vpop.permute.xlu0 %829  ;;  %v1162_v18 = vpop.permute.xlu1 %1161 }
 0x36f   : > { %1555 = vmatpush3.msra.mxu1 %v830_v14 }
 0x370   : > { %1557 = vmatmul.mubr.msk.f32.vlgmr.msra.gmra.mrb[6].mxu1 %vm574_vm2, %v828_v12  ;;  %1564 = vmatprep.subr.mxu1 %v1689_v9 }
 0x371   : > { %v1658_v16 = vpop.eup %1657  ;;  %1565 = vmatpush3.msra.mxu1 %v996_v13  ;;  %1566 = vmatprep.mubr.msk.f32.mxu1 %vm1688_vm0, %v1689_v9 }
 0x372   : > { %v994_v17 = vmul.f32 %v1658_v16, %v1650_v63  ;;  %1574 = vmatprep.subr.mxu1 %v1689_v9 }
 0x374   : > { %1567 = vmatmul.mubr.msk.f32.vlgmr.msra.gmra.mrb[8].mxu1 %vm574_vm2, %v994_v17 }
 0x375   : > { %v1660_v19 = vpop.eup %1659  ;;  %1575 = vmatpush3.msra.mxu1 %v1162_v18  ;;  %1576 = vmatprep.mubr.msk.f32.mxu1 %vm1688_vm0, %v1689_v9  ;;  %v1256_v9 = vld [vmem:[%s1934_s6 + $0x10] sm:$0xff] }
 0x376   : > { %v1160_v20 = vmul.f32 %v1660_v19, %v1652_v1  ;;  %v1606_v27 = vpack.c.bf16 %v1257_v26, %v1256_v9 }
 0x378   : > { %1577 = vmatmul.mubr.msk.f32.vlgmr.msra.gmra.mrb[10].mxu1 %vm574_vm2, %v1160_v20  ;;  %1607 = vmatpush3.bf16.msra.mxu0 %v1606_v27 }
 0x3da   : > { %v735_v21 = vpop.f32.mrb[4].mxu1 }
 0x3db   : > { %v1548_v22 = vpop.f32.mrb[5].mxu1 }
 0x443   : > { %v901_v28 = vpop.f32.mrb[6].mxu1 }
 0x444   : > { %1238 = vrot.lane.b32.xlu0 %v901_v28, %s1697_s26  ;;  %v1558_v29 = vpop.f32.mrb[7].mxu1 }
 0x447   : > { %v1067_v30 = vpop.f32.mrb[8].mxu1 }
 0x448   : > { %1242 = vrot.lane.b32.xlu1 %v1067_v30, %s1698_s27  ;;  %v1568_v31 = vpop.f32.mrb[9].mxu1 }
 0x44b   : > { %v1233_v32 = vpop.f32.mrb[10].mxu1 }
 0x44c   : > { %1246 = vrot.lane.b32.xlu0 %v1233_v32, %s1699_s28  ;;  %v1578_v3 = vpop.f32.mrb[11].mxu1 }
 0x4b6   : > { %v1239_v33 = vpop.permute.xlu0 %1238 }
 0x4b7   : > { %v1249_v35 = vsel %vm574_vm2, %v735_v21, %v1239_v33 }
 0x4ba   : > { %v1243_v34 = vpop.permute.xlu1 %1242 }
 0x4bb   : > { %v1251_v36 = vsel %vm1250_vm3, %v1249_v35, %v1243_v34 }
 0x4be   : > { %v1247_v37 = vpop.permute.xlu0 %1246 }
 0x4bf   : > { %v1253_v38 = vsel %vm1252_vm4, %v1251_v36, %v1247_v37 }
 0x4c0   : > { %1588 = vmatmul.mubr.msk.f32.vlgmr.msra.gmra.mrb[8].mxu0 %vm416_vm1, %v1253_v38 }
 0x593   : > { %v1334_v40 = vpop.f32.mrb[8].mxu0 }
 0x594   : > { %v1335_v41 = vadd.f32 %v1480_v39, %v1334_v40  ;;  %v1589_v42 = vpop.f32.mrb[9].mxu0 }
 0x596   : > { %v1338_v43 = vadd.f32 %v1335_v41, %v1819_v15  ;;  %v1482_v15 = vld [vmem:[%s1936_s8] ss:$0 sm:$0xff] }
 0x598   : > { %v1339_v44 = vsel %vm416_vm1, %v1338_v43, 0.0 }
 0x599   : > { %1340 = vadd.xlane.f32.xlu1 %v1339_v44 }
 0x626   : > { %v1341_v45 = vpop.xlane.xlu1 %1340 }
 0x627   : > { %v1343_v46 = vmul.f32 0.03125, %v1341_v45 }
 0x629   : > { %v1344_v47 = vsub.f32 %v1338_v43, %v1343_v46 }
 0x62b   : > { %v1345_v48 = vmul.f32 %v1344_v47, %v1344_v47 }
 0x62d   : > { %v1346_v49 = vsel %vm416_vm1, %v1345_v48, 0.0 }
 0x62e   : > { %1347 = vadd.xlane.f32.xlu0 %v1346_v49 }
 0x6bb   : > { %v1348_v50 = vpop.xlane.xlu0 %1347 }
 0x6bc   : > { %v1349_v51 = vmul.f32 0.03125, %v1348_v50 }
 0x6be   : > { %v1350_v52 = vadd.f32 1e-05, %v1349_v51 }
 0x6c0   : > { %1661 = vrsqrt.f32 %v1350_v52 }
 0x6ca   : > { %v1662_v53 = vpop.eup %1661 }
 0x6cb   : > { %v1352_v54 = vmul.f32 %v1662_v53, %v1344_v47 }
 0x6cd   : > { %v1360_v56 = vmul.f32 %v1482_v15, %v1352_v54 }
 0x6cf   : > { %v1368_v57 = vadd.f32 %v1483_v55, %v1360_v56 }
 0x6d1   : > { %1369 = vst.msk [vmem:[%s402_s22] sm:$0xff] %vm416_vm1, %v1368_v57 }
 0x6d2 PF: > { %s20_s15 = sadd.s32 1, %s1685_s15   ;;  %s1939_s13 = smov %s1681_s14 }
 0x6d3   : > { %p17_p5 = scmp.ge.s32.totalorder %s20_s15, 4   ;;  %s1940_s14 = smov %s1942_s16 }
 0x6d5   :  { %19 = sbr.rel (!%p17_p5) target bundleno = 2 (0x2), region = 93 }

</bundles_post_ra>
